<compile_context>
chip_gen: v6e
topology: v6e:2x2x1
jax: 0.10.0
libtpu: 0.0.40
codegen_flags: <defaults>
</compile_context>

<pallas_src>
import functools

import numpy as np
import jax
import jax.numpy as jnp
from jax.experimental import pallas as pl
from jax.experimental.pallas import tpu as pltpu

BN_EPS = 1e-5
LANES = 128   # feature dims are zero-padded to the lane width


# ---------------------------------------------------------------------------
# Fused kernel: the whole per-graph forward pass, activation resident in VMEM.
# ---------------------------------------------------------------------------
def ring_gin_fused_kernel(
    x_ref,        # (N, LANES)          f32  padded node features (graph dim squeezed)
    w_init_ref,   # (LANES, LANES)      bf16 init_linear weight (zero-padded)
    conv_w_ref,   # (2*L, LANES, LANES) bf16 [2*l]=lin1, [2*l+1]=lin2 of conv l
    vec_ref,      # (2+4*L, LANES)      f32  [0]=b_init, [1]=b_out,
                  #                          [2+2k]=gamma_k, [3+2k]=beta_k
    w_out_ref,    # (LANES, LANES)      bf16 lin1 weight (pad rows/cols are 0)
    o_ref,        # (N, LANES)          f32  lane-dense lin1 output on ALL nodes
    *, num_layers, n_nodes,
):
    f32 = jnp.float32
    bf16 = jnp.bfloat16
    inv_n = 1.0 / n_nodes

    vec = vec_ref[...]
    b_init = vec[0:1, :]
    b_out = vec[1:2, :]

    def bn_relu(z, idx):
        # Fused BatchNorm1d (batch stats, biased var) + ReLU:
        # one reduction pass, one scale+shift; rsqrt goes to the EUP slot.
        gamma = vec[2 + 2 * idx: 3 + 2 * idx, :]
        beta = vec[3 + 2 * idx: 4 + 2 * idx, :]
        s1 = jnp.sum(z, axis=0, keepdims=True)
        s2 = jnp.sum(z * z, axis=0, keepdims=True)
        mean = s1 * inv_n
        var = s2 * inv_n - mean * mean
        scale = gamma * jax.lax.rsqrt(var + BN_EPS)
        shift = beta - mean * scale
        return jnp.maximum(z * scale + shift, 0.0)

    # init_linear (bias kept: no BN follows it)
    x = jnp.dot(x_ref[...].astype(bf16), w_init_ref[...],
                preferred_element_type=f32) + b_init

    for layer in range(num_layers):
        # Ring aggregation: (I + A) @ x for a cycle graph == x_i + x_{i-1} + x_{i+1}.
        # XLU sublane rotations instead of slice-concat copies (and no dense A_hat).
        left = pltpu.roll(x, shift=1, axis=0)            # x_{i-1}
        right = pltpu.roll(x, shift=n_nodes - 1, axis=0)  # x_{i+1}
        h = (x + left + right).astype(bf16)

        # MLP block 1: Linear (bias cancelled by the following BN) -> BN -> ReLU
        z = jnp.dot(h, conv_w_ref[2 * layer], preferred_element_type=f32)
        z = bn_relu(z, 2 * layer)

        # MLP block 2: Linear -> BN -> ReLU
        z = jnp.dot(z.astype(bf16), conv_w_ref[2 * layer + 1],
                    preferred_element_type=f32)
        x = bn_relu(z, 2 * layer + 1)
        # (the outer relu after conv1 is a no-op: the MLP already ends in relu)

    # lin1 on ALL rows (same single MXU push as 2 rows), lane-dense (N, 128) store.
    # The static node mask and the real num_classes columns are sliced outside.
    # TODO(synk): a runtime-dynamic node mask would need scalar prefetch
    # (PrefetchScalarGridSpec) instead of the static slice in the wrapper.
    o_ref[...] = jnp.dot(x.astype(bf16), w_out_ref[...],
                         preferred_element_type=f32) + b_out


# ---------------------------------------------------------------------------
# Wrapper: one pallas_call over a batch of G rings (grid axis marked "parallel").
# ---------------------------------------------------------------------------
def ring_gin_forward(x, params, mask_rows, *, num_layers, num_classes):
    num_graphs, n_nodes, num_features = x.shape

    # lane-pad node features once (glue, done outside the kernel)
    x_pad = (jnp.zeros((num_graphs, n_nodes, LANES), jnp.float32)
             .at[:, :, :num_features].set(x))

    kernel = functools.partial(
        ring_gin_fused_kernel, num_layers=num_layers, n_nodes=n_nodes)

    def full_spec(arr):
        shape = arr.shape
        return pl.BlockSpec(shape, lambda g, _s=shape: (0,) * len(_s))

    out_full = pl.pallas_call(
        kernel,
        out_shape=jax.ShapeDtypeStruct((num_graphs, n_nodes, LANES), jnp.float32),
        grid=(num_graphs,),
        in_specs=[
            pl.BlockSpec((None, n_nodes, LANES), lambda g: (g, 0, 0)),
            full_spec(params["w_init"]),
            full_spec(params["conv_w"]),
            full_spec(params["vec"]),
            full_spec(params["w_out"]),
        ],
        out_specs=pl.BlockSpec((None, n_nodes, LANES), lambda g: (g, 0, 0)),
        compiler_params=pltpu.CompilerParams(
            dimension_semantics=("parallel",)),   # v7x: shard graphs across both TCs
    )(x_pad, params["w_init"], params["conv_w"], params["vec"], params["w_out"])

    rows = jnp.asarray(mask_rows, dtype=jnp.int32)
    return out_full[:, rows, :num_classes]        # x[mask]; lin1's real output columns


# ---------------------------------------------------------------------------
# Deterministic parameter construction (torch-style uniform init), padded/stacked.
# ---------------------------------------------------------------------------
def _uniform_linear(key, fan_in, fan_out):
    kw, kb = jax.random.split(key)
    bound = 1.0 / np.sqrt(fan_in)
    w = jax.random.uniform(kw, (fan_in, fan_out), jnp.float32, -bound, bound)
    b = jax.random.uniform(kb, (fan_out,), jnp.float32, -bound, bound)
    return w, b


def _pad_w(w, rows, cols, dtype):
    return (jnp.zeros((rows, cols), jnp.float32)
            .at[: w.shape[0], : w.shape[1]].set(w).astype(dtype))


def make_params(key, num_features, hidden, num_classes, num_layers):
    keys = jax.random.split(key, 2 * num_layers + 2)

    w0, b0 = _uniform_linear(keys[0], num_features, num_features)
    w_init = _pad_w(w0, LANES, LANES, jnp.bfloat16)

    conv_w = []
    for layer in range(num_layers):
        fan_in = num_features if layer == 0 else hidden
        # per-conv linear biases are dropped: they cancel against BN mean subtraction
        w1, _ = _uniform_linear(keys[1 + 2 * layer], fan_in, hidden)
        w2, _ = _uniform_linear(keys[2 + 2 * layer], hidden, hidden)
        conv_w.append(_pad_w(w1, LANES, LANES, jnp.bfloat16))
        conv_w.append(_pad_w(w2, LANES, LANES, jnp.bfloat16))

    wl, bl = _uniform_linear(keys[-1], hidden, num_classes)
    w_out = _pad_w(wl, LANES, LANES, jnp.bfloat16)   # pad rows & output cols with 0

    # Packed vector slab: [b_init, b_out, gamma_0, beta_0, ..., gamma_{2L-1}, beta_{2L-1}]
    # BatchNorm1d default init: gamma = 1, beta = 0.  Pad lanes get gamma = 0 so they
    # stay exactly zero through every BN (rsqrt(0 + eps) * 0 == 0).
    vec = jnp.zeros((2 + 4 * num_layers, LANES), jnp.float32)
    vec = vec.at[0, :num_features].set(b0)
    vec = vec.at[1, :num_classes].set(bl)
    for k in range(2 * num_layers):
        vec = vec.at[2 + 2 * k, :hidden].set(1.0)    # gamma; beta row stays 0

    return {
        "w_init": w_init,                            # (128, 128)    bf16
        "conv_w": jnp.stack(conv_w, axis=0),         # (2L, 128, 128) bf16
        "vec": vec,                                  # (2+4L, 128)   f32
        "w_out": w_out,                              # (128, 128)    bf16
    }


# ---------------------------------------------------------------------------
if __name__ == "__main__":
    NUM_GRAPHS = 8     # batch of independent rings (amortizes launch overhead)
    N_NODES = 16       # ring length
    NUM_FEATURES = 8
    HIDDEN = 32
    NUM_CLASSES = 4
    NUM_LAYERS = 3     # conv1 + 2 extra convs

    root = jax.random.PRNGKey(0)
    k_x, k_p = jax.random.split(root)

    # Node features for each graph in the batch
    x = jax.random.normal(k_x, (NUM_GRAPHS, N_NODES, NUM_FEATURES), jnp.float32)

    # Ring graph: node i <-> (i+1) % N.  The circulant adjacency is folded into the
    # kernel as two XLU sublane rolls, so no edge_index / dense A_hat is built.
    # Static boolean node mask -> static row indices sliced in the wrapper.
    mask = np.zeros((N_NODES,), dtype=bool)
    mask[0] = True
    mask[N_NODES // 2] = True
    mask_rows = tuple(int(i) for i in np.nonzero(mask)[0])

    params = make_params(k_p, NUM_FEATURES, HIDDEN, NUM_CLASSES, NUM_LAYERS)

    out = ring_gin_forward(x, params, mask_rows,
                           num_layers=NUM_LAYERS, num_classes=NUM_CLASSES)
    out = jax.block_until_ready(out)
    assert out.shape == (NUM_GRAPHS, len(mask_rows), NUM_CLASSES)
    assert bool(jnp.all(jnp.isfinite(out)))
    print("KERNEL_OK")
</pallas_src>

<mosaic_0001>
module attributes {stable_mosaic.version = 11 : i64} {
  func.func @ring_gin_fused_kernel(%arg0: i32, %arg1: memref<1x16x128xf32, #tpu.memory_space<vmem>>, %arg2: memref<128x128xbf16, #tpu.memory_space<vmem>>, %arg3: memref<6x128x128xbf16, #tpu.memory_space<vmem>>, %arg4: memref<14x128xf32, #tpu.memory_space<vmem>>, %arg5: memref<128x128xbf16, #tpu.memory_space<vmem>>, %arg6: memref<1x16x128xf32, #tpu.memory_space<vmem>>) attributes {dimension_semantics = [#tpu.dimension_semantics<parallel>], iteration_bounds = array<i64: 8>, scalar_prefetch = 0 : i64, scratch_operands = 0 : i64, tpu.core_type = #tpu.core_type<tc>, window_params = [{transform_indices = @transform_0, window_bounds = array<i64: 1, 16, 128>}, {pipeline_mode = #tpu.pipeline_mode<synchronous>, transform_indices = @transform_1, window_bounds = array<i64: 128, 128>}, {pipeline_mode = #tpu.pipeline_mode<synchronous>, transform_indices = @transform_2, window_bounds = array<i64: 6, 128, 128>}, {pipeline_mode = #tpu.pipeline_mode<synchronous>, transform_indices = @transform_3, window_bounds = array<i64: 14, 128>}, {pipeline_mode = #tpu.pipeline_mode<synchronous>, transform_indices = @transform_4, window_bounds = array<i64: 128, 128>}, {transform_indices = @transform_5, window_bounds = array<i64: 1, 16, 128>}]} {
    %c0 = arith.constant 0 : index
    %c0_0 = arith.constant 0 : index
    %0 = vector.load %arg4[%c0, %c0_0] : memref<14x128xf32, #tpu.memory_space<vmem>>, vector<14x128xf32>
    %1 = vector.extract_strided_slice %0 {offsets = [0, 0], sizes = [1, 128], strides = [1, 1]} : vector<14x128xf32> to vector<1x128xf32>
    %2 = vector.extract_strided_slice %0 {offsets = [1, 0], sizes = [1, 128], strides = [1, 1]} : vector<14x128xf32> to vector<1x128xf32>
    %c0_1 = arith.constant 0 : index
    %c0_2 = arith.constant 0 : index
    %c0_3 = arith.constant 0 : index
    %3 = vector.load %arg1[%c0_1, %c0_2, %c0_3] : memref<1x16x128xf32, #tpu.memory_space<vmem>>, vector<1x16x128xf32>
    %4 = vector.shape_cast %3 : vector<1x16x128xf32> to vector<16x128xf32>
    %5 = arith.truncf %4 : vector<16x128xf32> to vector<16x128xbf16>
    %c0_4 = arith.constant 0 : index
    %c0_5 = arith.constant 0 : index
    %6 = vector.load %arg2[%c0_4, %c0_5] : memref<128x128xbf16, #tpu.memory_space<vmem>>, vector<128x128xbf16>
    %cst = arith.constant dense<0.000000e+00> : vector<16x128xf32>
    %7 = tpu.matmul %5, %6, %cst {dimension_numbers = #tpu.dot_dimension_numbers<[1], [0], [0], [1], [0, 0, 1, 1], [], []>} : vector<16x128xbf16>, vector<128x128xbf16>, vector<16x128xf32> -> vector<16x128xf32>
    %8 = vector.broadcast %1 : vector<1x128xf32> to vector<16x128xf32>
    %9 = arith.addf %7, %8 : vector<16x128xf32>
    %c1_i32 = arith.constant 1 : i32
    %10 = tpu.dynamic_rotate %9 by %c1_i32 dim 0 : vector<16x128xf32>, i32 -> vector<16x128xf32>
    %c15_i32 = arith.constant 15 : i32
    %11 = tpu.dynamic_rotate %9 by %c15_i32 dim 0 : vector<16x128xf32>, i32 -> vector<16x128xf32>
    %12 = arith.addf %9, %10 : vector<16x128xf32>
    %13 = arith.addf %12, %11 : vector<16x128xf32>
    %14 = arith.truncf %13 : vector<16x128xf32> to vector<16x128xbf16>
    %c0_6 = arith.constant 0 : index
    %c0_7 = arith.constant 0 : index
    %c0_8 = arith.constant 0 : index
    %15 = vector.load %arg3[%c0_6, %c0_7, %c0_8] : memref<6x128x128xbf16, #tpu.memory_space<vmem>>, vector<1x128x128xbf16>
    %16 = vector.shape_cast %15 : vector<1x128x128xbf16> to vector<128x128xbf16>
    %cst_9 = arith.constant dense<0.000000e+00> : vector<16x128xf32>
    %17 = tpu.matmul %14, %16, %cst_9 {dimension_numbers = #tpu.dot_dimension_numbers<[1], [0], [0], [1], [0, 0, 1, 1], [], []>} : vector<16x128xbf16>, vector<128x128xbf16>, vector<16x128xf32> -> vector<16x128xf32>
    %18 = vector.extract_strided_slice %0 {offsets = [2, 0], sizes = [1, 128], strides = [1, 1]} : vector<14x128xf32> to vector<1x128xf32>
    %19 = vector.extract_strided_slice %0 {offsets = [3, 0], sizes = [1, 128], strides = [1, 1]} : vector<14x128xf32> to vector<1x128xf32>
    %cst_10 = arith.constant dense<0.000000e+00> : vector<128xf32>
    %20 = vector.multi_reduction <add>, %17, %cst_10 [0] : vector<16x128xf32> to vector<128xf32>
    %21 = vector.shape_cast %20 : vector<128xf32> to vector<1x128xf32>
    %22 = arith.mulf %17, %17 : vector<16x128xf32>
    %cst_11 = arith.constant dense<0.000000e+00> : vector<128xf32>
    %23 = vector.multi_reduction <add>, %22, %cst_11 [0] : vector<16x128xf32> to vector<128xf32>
    %24 = vector.shape_cast %23 : vector<128xf32> to vector<1x128xf32>
    %cst_12 = arith.constant 6.250000e-02 : f32
    %25 = vector.broadcast %cst_12 : f32 to vector<1x128xf32>
    %26 = arith.mulf %21, %25 : vector<1x128xf32>
    %cst_13 = arith.constant 6.250000e-02 : f32
    %27 = vector.broadcast %cst_13 : f32 to vector<1x128xf32>
    %28 = arith.mulf %24, %27 : vector<1x128xf32>
    %29 = arith.mulf %26, %26 : vector<1x128xf32>
    %30 = arith.subf %28, %29 : vector<1x128xf32>
    %cst_14 = arith.constant 9.99999974E-6 : f32
    %31 = vector.broadcast %cst_14 : f32 to vector<1x128xf32>
    %32 = arith.addf %30, %31 : vector<1x128xf32>
    %33 = math.rsqrt %32 : vector<1x128xf32>
    %34 = arith.mulf %18, %33 : vector<1x128xf32>
    %35 = arith.mulf %26, %34 : vector<1x128xf32>
    %36 = arith.subf %19, %35 : vector<1x128xf32>
    %37 = vector.broadcast %34 : vector<1x128xf32> to vector<16x128xf32>
    %38 = arith.mulf %17, %37 : vector<16x128xf32>
    %39 = vector.broadcast %36 : vector<1x128xf32> to vector<16x128xf32>
    %40 = arith.addf %38, %39 : vector<16x128xf32>
    %cst_15 = arith.constant 0.000000e+00 : f32
    %41 = vector.broadcast %cst_15 : f32 to vector<16x128xf32>
    %42 = arith.maximumf %40, %41 : vector<16x128xf32>
    %43 = arith.truncf %42 : vector<16x128xf32> to vector<16x128xbf16>
    %c1 = arith.constant 1 : index
    %c0_16 = arith.constant 0 : index
    %c0_17 = arith.constant 0 : index
    %44 = vector.load %arg3[%c1, %c0_16, %c0_17] : memref<6x128x128xbf16, #tpu.memory_space<vmem>>, vector<1x128x128xbf16>
    %45 = vector.shape_cast %44 : vector<1x128x128xbf16> to vector<128x128xbf16>
    %cst_18 = arith.constant dense<0.000000e+00> : vector<16x128xf32>
    %46 = tpu.matmul %43, %45, %cst_18 {dimension_numbers = #tpu.dot_dimension_numbers<[1], [0], [0], [1], [0, 0, 1, 1], [], []>} : vector<16x128xbf16>, vector<128x128xbf16>, vector<16x128xf32> -> vector<16x128xf32>
    %47 = vector.extract_strided_slice %0 {offsets = [4, 0], sizes = [1, 128], strides = [1, 1]} : vector<14x128xf32> to vector<1x128xf32>
    %48 = vector.extract_strided_slice %0 {offsets = [5, 0], sizes = [1, 128], strides = [1, 1]} : vector<14x128xf32> to vector<1x128xf32>
    %cst_19 = arith.constant dense<0.000000e+00> : vector<128xf32>
    %49 = vector.multi_reduction <add>, %46, %cst_19 [0] : vector<16x128xf32> to vector<128xf32>
    %50 = vector.shape_cast %49 : vector<128xf32> to vector<1x128xf32>
    %51 = arith.mulf %46, %46 : vector<16x128xf32>
    %cst_20 = arith.constant dense<0.000000e+00> : vector<128xf32>
    %52 = vector.multi_reduction <add>, %51, %cst_20 [0] : vector<16x128xf32> to vector<128xf32>
    %53 = vector.shape_cast %52 : vector<128xf32> to vector<1x128xf32>
    %cst_21 = arith.constant 6.250000e-02 : f32
    %54 = vector.broadcast %cst_21 : f32 to vector<1x128xf32>
    %55 = arith.mulf %50, %54 : vector<1x128xf32>
    %cst_22 = arith.constant 6.250000e-02 : f32
    %56 = vector.broadcast %cst_22 : f32 to vector<1x128xf32>
    %57 = arith.mulf %53, %56 : vector<1x128xf32>
    %58 = arith.mulf %55, %55 : vector<1x128xf32>
    %59 = arith.subf %57, %58 : vector<1x128xf32>
    %cst_23 = arith.constant 9.99999974E-6 : f32
    %60 = vector.broadcast %cst_23 : f32 to vector<1x128xf32>
    %61 = arith.addf %59, %60 : vector<1x128xf32>
    %62 = math.rsqrt %61 : vector<1x128xf32>
    %63 = arith.mulf %47, %62 : vector<1x128xf32>
    %64 = arith.mulf %55, %63 : vector<1x128xf32>
    %65 = arith.subf %48, %64 : vector<1x128xf32>
    %66 = vector.broadcast %63 : vector<1x128xf32> to vector<16x128xf32>
    %67 = arith.mulf %46, %66 : vector<16x128xf32>
    %68 = vector.broadcast %65 : vector<1x128xf32> to vector<16x128xf32>
    %69 = arith.addf %67, %68 : vector<16x128xf32>
    %cst_24 = arith.constant 0.000000e+00 : f32
    %70 = vector.broadcast %cst_24 : f32 to vector<16x128xf32>
    %71 = arith.maximumf %69, %70 : vector<16x128xf32>
    %c1_i32_25 = arith.constant 1 : i32
    %72 = tpu.dynamic_rotate %71 by %c1_i32_25 dim 0 : vector<16x128xf32>, i32 -> vector<16x128xf32>
    %c15_i32_26 = arith.constant 15 : i32
    %73 = tpu.dynamic_rotate %71 by %c15_i32_26 dim 0 : vector<16x128xf32>, i32 -> vector<16x128xf32>
    %74 = arith.addf %71, %72 : vector<16x128xf32>
    %75 = arith.addf %74, %73 : vector<16x128xf32>
    %76 = arith.truncf %75 : vector<16x128xf32> to vector<16x128xbf16>
    %c2 = arith.constant 2 : index
    %c0_27 = arith.constant 0 : index
    %c0_28 = arith.constant 0 : index
    %77 = vector.load %arg3[%c2, %c0_27, %c0_28] : memref<6x128x128xbf16, #tpu.memory_space<vmem>>, vector<1x128x128xbf16>
    %78 = vector.shape_cast %77 : vector<1x128x128xbf16> to vector<128x128xbf16>
    %cst_29 = arith.constant dense<0.000000e+00> : vector<16x128xf32>
    %79 = tpu.matmul %76, %78, %cst_29 {dimension_numbers = #tpu.dot_dimension_numbers<[1], [0], [0], [1], [0, 0, 1, 1], [], []>} : vector<16x128xbf16>, vector<128x128xbf16>, vector<16x128xf32> -> vector<16x128xf32>
    %80 = vector.extract_strided_slice %0 {offsets = [6, 0], sizes = [1, 128], strides = [1, 1]} : vector<14x128xf32> to vector<1x128xf32>
    %81 = vector.extract_strided_slice %0 {offsets = [7, 0], sizes = [1, 128], strides = [1, 1]} : vector<14x128xf32> to vector<1x128xf32>
    %cst_30 = arith.constant dense<0.000000e+00> : vector<128xf32>
    %82 = vector.multi_reduction <add>, %79, %cst_30 [0] : vector<16x128xf32> to vector<128xf32>
    %83 = vector.shape_cast %82 : vector<128xf32> to vector<1x128xf32>
    %84 = arith.mulf %79, %79 : vector<16x128xf32>
    %cst_31 = arith.constant dense<0.000000e+00> : vector<128xf32>
    %85 = vector.multi_reduction <add>, %84, %cst_31 [0] : vector<16x128xf32> to vector<128xf32>
    %86 = vector.shape_cast %85 : vector<128xf32> to vector<1x128xf32>
    %cst_32 = arith.constant 6.250000e-02 : f32
    %87 = vector.broadcast %cst_32 : f32 to vector<1x128xf32>
    %88 = arith.mulf %83, %87 : vector<1x128xf32>
    %cst_33 = arith.constant 6.250000e-02 : f32
    %89 = vector.broadcast %cst_33 : f32 to vector<1x128xf32>
    %90 = arith.mulf %86, %89 : vector<1x128xf32>
    %91 = arith.mulf %88, %88 : vector<1x128xf32>
    %92 = arith.subf %90, %91 : vector<1x128xf32>
    %cst_34 = arith.constant 9.99999974E-6 : f32
    %93 = vector.broadcast %cst_34 : f32 to vector<1x128xf32>
    %94 = arith.addf %92, %93 : vector<1x128xf32>
    %95 = math.rsqrt %94 : vector<1x128xf32>
    %96 = arith.mulf %80, %95 : vector<1x128xf32>
    %97 = arith.mulf %88, %96 : vector<1x128xf32>
    %98 = arith.subf %81, %97 : vector<1x128xf32>
    %99 = vector.broadcast %96 : vector<1x128xf32> to vector<16x128xf32>
    %100 = arith.mulf %79, %99 : vector<16x128xf32>
    %101 = vector.broadcast %98 : vector<1x128xf32> to vector<16x128xf32>
    %102 = arith.addf %100, %101 : vector<16x128xf32>
    %cst_35 = arith.constant 0.000000e+00 : f32
    %103 = vector.broadcast %cst_35 : f32 to vector<16x128xf32>
    %104 = arith.maximumf %102, %103 : vector<16x128xf32>
    %105 = arith.truncf %104 : vector<16x128xf32> to vector<16x128xbf16>
    %c3 = arith.constant 3 : index
    %c0_36 = arith.constant 0 : index
    %c0_37 = arith.constant 0 : index
    %106 = vector.load %arg3[%c3, %c0_36, %c0_37] : memref<6x128x128xbf16, #tpu.memory_space<vmem>>, vector<1x128x128xbf16>
    %107 = vector.shape_cast %106 : vector<1x128x128xbf16> to vector<128x128xbf16>
    %cst_38 = arith.constant dense<0.000000e+00> : vector<16x128xf32>
    %108 = tpu.matmul %105, %107, %cst_38 {dimension_numbers = #tpu.dot_dimension_numbers<[1], [0], [0], [1], [0, 0, 1, 1], [], []>} : vector<16x128xbf16>, vector<128x128xbf16>, vector<16x128xf32> -> vector<16x128xf32>
    %109 = vector.extract_strided_slice %0 {offsets = [8, 0], sizes = [1, 128], strides = [1, 1]} : vector<14x128xf32> to vector<1x128xf32>
    %110 = vector.extract_strided_slice %0 {offsets = [9, 0], sizes = [1, 128], strides = [1, 1]} : vector<14x128xf32> to vector<1x128xf32>
    %cst_39 = arith.constant dense<0.000000e+00> : vector<128xf32>
    %111 = vector.multi_reduction <add>, %108, %cst_39 [0] : vector<16x128xf32> to vector<128xf32>
    %112 = vector.shape_cast %111 : vector<128xf32> to vector<1x128xf32>
    %113 = arith.mulf %108, %108 : vector<16x128xf32>
    %cst_40 = arith.constant dense<0.000000e+00> : vector<128xf32>
    %114 = vector.multi_reduction <add>, %113, %cst_40 [0] : vector<16x128xf32> to vector<128xf32>
    %115 = vector.shape_cast %114 : vector<128xf32> to vector<1x128xf32>
    %cst_41 = arith.constant 6.250000e-02 : f32
    %116 = vector.broadcast %cst_41 : f32 to vector<1x128xf32>
    %117 = arith.mulf %112, %116 : vector<1x128xf32>
    %cst_42 = arith.constant 6.250000e-02 : f32
    %118 = vector.broadcast %cst_42 : f32 to vector<1x128xf32>
    %119 = arith.mulf %115, %118 : vector<1x128xf32>
    %120 = arith.mulf %117, %117 : vector<1x128xf32>
    %121 = arith.subf %119, %120 : vector<1x128xf32>
    %cst_43 = arith.constant 9.99999974E-6 : f32
    %122 = vector.broadcast %cst_43 : f32 to vector<1x128xf32>
    %123 = arith.addf %121, %122 : vector<1x128xf32>
    %124 = math.rsqrt %123 : vector<1x128xf32>
    %125 = arith.mulf %109, %124 : vector<1x128xf32>
    %126 = arith.mulf %117, %125 : vector<1x128xf32>
    %127 = arith.subf %110, %126 : vector<1x128xf32>
    %128 = vector.broadcast %125 : vector<1x128xf32> to vector<16x128xf32>
    %129 = arith.mulf %108, %128 : vector<16x128xf32>
    %130 = vector.broadcast %127 : vector<1x128xf32> to vector<16x128xf32>
    %131 = arith.addf %129, %130 : vector<16x128xf32>
    %cst_44 = arith.constant 0.000000e+00 : f32
    %132 = vector.broadcast %cst_44 : f32 to vector<16x128xf32>
    %133 = arith.maximumf %131, %132 : vector<16x128xf32>
    %c1_i32_45 = arith.constant 1 : i32
    %134 = tpu.dynamic_rotate %133 by %c1_i32_45 dim 0 : vector<16x128xf32>, i32 -> vector<16x128xf32>
    %c15_i32_46 = arith.constant 15 : i32
    %135 = tpu.dynamic_rotate %133 by %c15_i32_46 dim 0 : vector<16x128xf32>, i32 -> vector<16x128xf32>
    %136 = arith.addf %133, %134 : vector<16x128xf32>
    %137 = arith.addf %136, %135 : vector<16x128xf32>
    %138 = arith.truncf %137 : vector<16x128xf32> to vector<16x128xbf16>
    %c4 = arith.constant 4 : index
    %c0_47 = arith.constant 0 : index
    %c0_48 = arith.constant 0 : index
    %139 = vector.load %arg3[%c4, %c0_47, %c0_48] : memref<6x128x128xbf16, #tpu.memory_space<vmem>>, vector<1x128x128xbf16>
    %140 = vector.shape_cast %139 : vector<1x128x128xbf16> to vector<128x128xbf16>
    %cst_49 = arith.constant dense<0.000000e+00> : vector<16x128xf32>
    %141 = tpu.matmul %138, %140, %cst_49 {dimension_numbers = #tpu.dot_dimension_numbers<[1], [0], [0], [1], [0, 0, 1, 1], [], []>} : vector<16x128xbf16>, vector<128x128xbf16>, vector<16x128xf32> -> vector<16x128xf32>
    %142 = vector.extract_strided_slice %0 {offsets = [10, 0], sizes = [1, 128], strides = [1, 1]} : vector<14x128xf32> to vector<1x128xf32>
    %143 = vector.extract_strided_slice %0 {offsets = [11, 0], sizes = [1, 128], strides = [1, 1]} : vector<14x128xf32> to vector<1x128xf32>
    %cst_50 = arith.constant dense<0.000000e+00> : vector<128xf32>
    %144 = vector.multi_reduction <add>, %141, %cst_50 [0] : vector<16x128xf32> to vector<128xf32>
    %145 = vector.shape_cast %144 : vector<128xf32> to vector<1x128xf32>
    %146 = arith.mulf %141, %141 : vector<16x128xf32>
    %cst_51 = arith.constant dense<0.000000e+00> : vector<128xf32>
    %147 = vector.multi_reduction <add>, %146, %cst_51 [0] : vector<16x128xf32> to vector<128xf32>
    %148 = vector.shape_cast %147 : vector<128xf32> to vector<1x128xf32>
    %cst_52 = arith.constant 6.250000e-02 : f32
    %149 = vector.broadcast %cst_52 : f32 to vector<1x128xf32>
    %150 = arith.mulf %145, %149 : vector<1x128xf32>
    %cst_53 = arith.constant 6.250000e-02 : f32
    %151 = vector.broadcast %cst_53 : f32 to vector<1x128xf32>
    %152 = arith.mulf %148, %151 : vector<1x128xf32>
    %153 = arith.mulf %150, %150 : vector<1x128xf32>
    %154 = arith.subf %152, %153 : vector<1x128xf32>
    %cst_54 = arith.constant 9.99999974E-6 : f32
    %155 = vector.broadcast %cst_54 : f32 to vector<1x128xf32>
    %156 = arith.addf %154, %155 : vector<1x128xf32>
    %157 = math.rsqrt %156 : vector<1x128xf32>
    %158 = arith.mulf %142, %157 : vector<1x128xf32>
    %159 = arith.mulf %150, %158 : vector<1x128xf32>
    %160 = arith.subf %143, %159 : vector<1x128xf32>
    %161 = vector.broadcast %158 : vector<1x128xf32> to vector<16x128xf32>
    %162 = arith.mulf %141, %161 : vector<16x128xf32>
    %163 = vector.broadcast %160 : vector<1x128xf32> to vector<16x128xf32>
    %164 = arith.addf %162, %163 : vector<16x128xf32>
    %cst_55 = arith.constant 0.000000e+00 : f32
    %165 = vector.broadcast %cst_55 : f32 to vector<16x128xf32>
    %166 = arith.maximumf %164, %165 : vector<16x128xf32>
    %167 = arith.truncf %166 : vector<16x128xf32> to vector<16x128xbf16>
    %c5 = arith.constant 5 : index
    %c0_56 = arith.constant 0 : index
    %c0_57 = arith.constant 0 : index
    %168 = vector.load %arg3[%c5, %c0_56, %c0_57] : memref<6x128x128xbf16, #tpu.memory_space<vmem>>, vector<1x128x128xbf16>
    %169 = vector.shape_cast %168 : vector<1x128x128xbf16> to vector<128x128xbf16>
    %cst_58 = arith.constant dense<0.000000e+00> : vector<16x128xf32>
    %170 = tpu.matmul %167, %169, %cst_58 {dimension_numbers = #tpu.dot_dimension_numbers<[1], [0], [0], [1], [0, 0, 1, 1], [], []>} : vector<16x128xbf16>, vector<128x128xbf16>, vector<16x128xf32> -> vector<16x128xf32>
    %171 = vector.extract_strided_slice %0 {offsets = [12, 0], sizes = [1, 128], strides = [1, 1]} : vector<14x128xf32> to vector<1x128xf32>
    %172 = vector.extract_strided_slice %0 {offsets = [13, 0], sizes = [1, 128], strides = [1, 1]} : vector<14x128xf32> to vector<1x128xf32>
    %cst_59 = arith.constant dense<0.000000e+00> : vector<128xf32>
    %173 = vector.multi_reduction <add>, %170, %cst_59 [0] : vector<16x128xf32> to vector<128xf32>
    %174 = vector.shape_cast %173 : vector<128xf32> to vector<1x128xf32>
    %175 = arith.mulf %170, %170 : vector<16x128xf32>
    %cst_60 = arith.constant dense<0.000000e+00> : vector<128xf32>
    %176 = vector.multi_reduction <add>, %175, %cst_60 [0] : vector<16x128xf32> to vector<128xf32>
    %177 = vector.shape_cast %176 : vector<128xf32> to vector<1x128xf32>
    %cst_61 = arith.constant 6.250000e-02 : f32
    %178 = vector.broadcast %cst_61 : f32 to vector<1x128xf32>
    %179 = arith.mulf %174, %178 : vector<1x128xf32>
    %cst_62 = arith.constant 6.250000e-02 : f32
    %180 = vector.broadcast %cst_62 : f32 to vector<1x128xf32>
    %181 = arith.mulf %177, %180 : vector<1x128xf32>
    %182 = arith.mulf %179, %179 : vector<1x128xf32>
    %183 = arith.subf %181, %182 : vector<1x128xf32>
    %cst_63 = arith.constant 9.99999974E-6 : f32
    %184 = vector.broadcast %cst_63 : f32 to vector<1x128xf32>
    %185 = arith.addf %183, %184 : vector<1x128xf32>
    %186 = math.rsqrt %185 : vector<1x128xf32>
    %187 = arith.mulf %171, %186 : vector<1x128xf32>
    %188 = arith.mulf %179, %187 : vector<1x128xf32>
    %189 = arith.subf %172, %188 : vector<1x128xf32>
    %190 = vector.broadcast %187 : vector<1x128xf32> to vector<16x128xf32>
    %191 = arith.mulf %170, %190 : vector<16x128xf32>
    %192 = vector.broadcast %189 : vector<1x128xf32> to vector<16x128xf32>
    %193 = arith.addf %191, %192 : vector<16x128xf32>
    %cst_64 = arith.constant 0.000000e+00 : f32
    %194 = vector.broadcast %cst_64 : f32 to vector<16x128xf32>
    %195 = arith.maximumf %193, %194 : vector<16x128xf32>
    %196 = arith.truncf %195 : vector<16x128xf32> to vector<16x128xbf16>
    %c0_65 = arith.constant 0 : index
    %c0_66 = arith.constant 0 : index
    %197 = vector.load %arg5[%c0_65, %c0_66] : memref<128x128xbf16, #tpu.memory_space<vmem>>, vector<128x128xbf16>
    %cst_67 = arith.constant dense<0.000000e+00> : vector<16x128xf32>
    %198 = tpu.matmul %196, %197, %cst_67 {dimension_numbers = #tpu.dot_dimension_numbers<[1], [0], [0], [1], [0, 0, 1, 1], [], []>} : vector<16x128xbf16>, vector<128x128xbf16>, vector<16x128xf32> -> vector<16x128xf32>
    %199 = vector.broadcast %2 : vector<1x128xf32> to vector<16x128xf32>
    %200 = arith.addf %198, %199 : vector<16x128xf32>
    %c0_68 = arith.constant 0 : index
    %c0_69 = arith.constant 0 : index
    %c0_70 = arith.constant 0 : index
    %201 = vector.load %arg6[%c0_68, %c0_69, %c0_70] : memref<1x16x128xf32, #tpu.memory_space<vmem>>, vector<1x16x128xf32>
    %202 = vector.shape_cast %201 : vector<1x16x128xf32> to vector<16x128xf32>
    %203 = vector.shape_cast %200 : vector<16x128xf32> to vector<1x16x128xf32>
    tpu.vector_store %arg6[%c0_68, %c0_69, %c0_70], %203 {strides = array<i32>} : memref<1x16x128xf32, #tpu.memory_space<vmem>>, vector<1x16x128xf32>,
    return
  }
  func.func @transform_0(%arg0: i32) -> (i32, i32, i32) {
    %c0_i32 = arith.constant 0 : i32
    %c0_i32_0 = arith.constant 0 : i32
    %c0_i32_1 = arith.constant 0 : i32
    return %arg0, %c0_i32, %c0_i32_0 : i32, i32, i32
  }
  func.func @transform_1(%arg0: i32) -> (i32, i32) {
    %c0_i32 = arith.constant 0 : i32
    %c0_i32_0 = arith.constant 0 : i32
    %c0_i32_1 = arith.constant 0 : i32
    return %c0_i32, %c0_i32_0 : i32, i32
  }
  func.func @transform_2(%arg0: i32) -> (i32, i32, i32) {
    %c0_i32 = arith.constant 0 : i32
    %c0_i32_0 = arith.constant 0 : i32
    %c0_i32_1 = arith.constant 0 : i32
    %c0_i32_2 = arith.constant 0 : i32
    return %c0_i32, %c0_i32_0, %c0_i32_1 : i32, i32, i32
  }
  func.func @transform_3(%arg0: i32) -> (i32, i32) {
    %c0_i32 = arith.constant 0 : i32
    %c0_i32_0 = arith.constant 0 : i32
    %c0_i32_1 = arith.constant 0 : i32
    return %c0_i32, %c0_i32_0 : i32, i32
  }
  func.func @transform_4(%arg0: i32) -> (i32, i32) {
    %c0_i32 = arith.constant 0 : i32
    %c0_i32_0 = arith.constant 0 : i32
    %c0_i32_1 = arith.constant 0 : i32
    return %c0_i32, %c0_i32_0 : i32, i32
  }
  func.func @transform_5(%arg0: i32) -> (i32, i32, i32) {
    %c0_i32 = arith.constant 0 : i32
    %c0_i32_0 = arith.constant 0 : i32
    %c0_i32_1 = arith.constant 0 : i32
    return %arg0, %c0_i32, %c0_i32_0 : i32, i32, i32
  }
}

</mosaic_0001>

<bundles_post_ra>
// kernel: tpu_custom_call.1
= control target key start
LH: loop header
LB: loop body
LE: loop exit
PB: predicated region body
PF: predicated region fallthrough
CT: control target
= control target key end

     0   :  { %10 = vsyncpa [#allocation3], 0  ;;  %s2714_s0 = inlined_call_operand.hbm [shape: f32[8,16,128], index: 0, kind: input, shape index: {}]   ;;  %s2715_s1 = inlined_call_operand.hbm [shape: bf16[128,128], index: 1, kind: input, shape index: {}]   ;;  %s2716_s2 = inlined_call_operand.hbm [shape: bf16[6,128,128], index: 2, kind: input, shape index: {}]   ;;  %s2717_s3 = inlined_call_operand.hbm [shape: f32[14,128], index: 3, kind: input, shape index: {}]   ;;  %s2718_s4 = inlined_call_operand.hbm [shape: bf16[128,128], index: 4, kind: input, shape index: {}]   ;;  %s2719_s5 = inlined_call_operand.hbm [shape: f32[8,16,128], index: 5, kind: output, shape index: {}]  }
   0x1   :  { %12 = vsyncpa [#allocation3 + $0x1], 0 }
   0x2   :  { %13 = vsyncpa [#allocation6], 0 }
   0x3   :  { %14 = vsyncpa [#allocation9], 0 }
   0x4   :  { %15 = vsyncpa [#allocation4], 0 }
   0x5   :  { %17 = vsyncpa [#allocation4 + $0x1], 0  ;;  %s2327_s18 = smov 0   ;;  %s2329_s19 = smov 0  }
   0x6   :  { %s2331_s20 = smov 0   ;;  %s2333_s21 = smov 0  }
   0x7 LB: > { %s2348_s22 = sadd.s32 4294967295, %s2281_s21   ;;  %s1586_s23 = sadd.s32 4294967294, %s2281_s21   ;;  %s2281_s21 = sphi %s2333_s21, %s2744_s21   ;;  %s2277_s20 = sphi %s2331_s20, %s2743_s20   ;;  %s2273_s19 = sphi %s2329_s19, %s2742_s19   ;;  %s2269_s18 = sphi %s2327_s18, %s2741_s18  }
   0x8   : > { %p43_p0 = scmp.ne.s32.totalorder %s2273_s19, %s2269_s18  ;;  %p2720_p1 = scmp.eq.s32.totalorder %s2348_s22, 0 }
   0x9   : > { %p157_p3 = scmp.eq.s32.totalorder %s1586_s23, 7  ;;  %p1587_p5 = scmp.ge.s32.totalorder %s2281_s21, 1 }
   0xa   : > { %p2357_p4 = por %p2720_p1, %p43_p0  ;;  %p164_p7 = scmp.lt.s32.totalorder %s2281_s21, 9 }
   0xb   : > { %p2362_p6 = por %p157_p3, %p43_p0  ;;  %s2283_s27 = smov [#allocation5]  }
   0xc   : > { %s2725_s24 = scalar_select %p2357_p4, 1, 0 }
   0xd   : > { %s2726_s25 = scalar_select %p2362_p6, 1, 0 }
   0xe   : > { %p2367_p8 = pnand %p1587_p5, %p164_p7  ;;  %s176_s28 = sshll.u32 %s2283_s27, 4  ;;  %s177_s28 = int_to_ptr.vmem [resolvable:$true] %s176_s28 }
   0xf   : > { %s2284_s30 = smov [#allocation8]   ;;  %s2088_s7 = scalar_lea.vmem %s177_s28, 1024 }
  0x10   : > { %s2727_s26 = scalar_select %p2367_p8, 1, 0 }
  0x11   : > { %p1926_p9 = pneg %p2367_p8  ;;  %s202_s6 = sshll.u32 %s2284_s30, 4  ;;  %s203_s6 = int_to_ptr.vmem [resolvable:$true] %s202_s6 }
  0x12   : > { %p2089_p12 = scmp.ne.s32.totalorder %s177_s28, %s2088_s7  ;;  %p2096_p3 = scmp.lt.s32.totalorder %s177_s28, %s177_s28 }
  0x13   : > { %p2375_p10 = pnand %p1926_p9, %p2720_p1  ;;  %p2097_p5 = scmp.lt.s32.totalorder %s2088_s7, %s2088_s7 }
  0x15   : > { %p2079_p11 = pneg %p2375_p10  ;;  %p2098_p7 = por %p2097_p5, %p2096_p3 }
  0x17   : > { %p2091_p13 = pnand %p2089_p12, %p2079_p11 }
  0x19   : > { %p2092_p0 = pneg %p2091_p13 }
  0x1b   : > { %p2099_p9 = pnand %p2098_p7, %p2092_p0 }
  0x1d   : > { %2102 = shalt.err (!%p2099_p9)
}
  0x1e   : > { %s2285_s8 = smov 64   ;;  %s2286_s9 = smov 4  }
  0x1f   : > { %1929 = dma.hbm_to_vmem [thread:$0]  (!%p2375_p10), %s2715_s1, 1024, %s177_s28, [#allocation6], %s2285_s8, %s2285_s8, %s2286_s9  }
  0x20   : > { %s2114_s12 = scalar_lea.vmem %s203_s6, 256  ;;  %p2122_p0 = scmp.lt.s32.totalorder %s203_s6, %s203_s6 }
  0x21   : > { %p2115_p12 = scmp.ne.s32.totalorder %s203_s6, %s2114_s12  ;;  %p2123_p5 = scmp.lt.s32.totalorder %s2114_s12, %s2114_s12 }
  0x23   : > { %p2117_p13 = pnand %p2115_p12, %p2079_p11  ;;  %p2124_p7 = por %p2123_p5, %p2122_p0 }
  0x25   : > { %p2118_p3 = pneg %p2117_p13 }
  0x27   : > { %p2125_p9 = pnand %p2124_p7, %p2118_p3 }
  0x29   : > { %2128 = shalt.err (!%p2125_p9)
}
  0x2a   : > { %s2721_s13 = smov 128   ;;  %s2288_s14 = smov 8  }
  0x2b   : > { %1935 = dma.hbm_to_vmem [thread:$0]  (!%p2375_p10), %s2717_s3, 256, %s203_s6, [#allocation9], %s2721_s13, %s2721_s13, %s2288_s14  }
  0x2c   : > { %s2289_s17 = smov [#allocation7]   ;;  %s2290_s27 = smov [#allocation10]  }
  0x2d   : > { %s189_s23 = sshll.u32 %s2289_s17, 4  ;;  %s215_s28 = sshll.u32 %s2290_s27, 4  ;;  %s190_s23 = int_to_ptr.vmem [resolvable:$true] %s189_s23  ;;  %s216_s28 = int_to_ptr.vmem [resolvable:$true] %s215_s28 }
  0x2e   : > { %s2140_s30 = scalar_lea.vmem %s190_s23, 6144  ;;  %p2148_p0 = scmp.lt.s32.totalorder %s190_s23, %s190_s23 }
  0x2f   : > { %p2141_p12 = scmp.ne.s32.totalorder %s190_s23, %s2140_s30  ;;  %p2149_p5 = scmp.lt.s32.totalorder %s2140_s30, %s2140_s30 }
  0x31   : > { %p2143_p13 = pnand %p2141_p12, %p2079_p11  ;;  %p2150_p7 = por %p2149_p5, %p2148_p0 }
  0x33   : > { %p2144_p3 = pneg %p2143_p13 }
  0x35   : > { %p2151_p9 = pnand %p2150_p7, %p2144_p3 }
  0x37   : > { %2154 = shalt.err (!%p2151_p9)
}
  0x38   : > { %1932 = dma.hbm_to_vmem [thread:$0]  (!%p2375_p10), %s2716_s2, 6144, %s190_s23, [#allocation6], %s2285_s8, %s2285_s8, %s2286_s9  }
  0x39   : > { %s2166_s10 = scalar_lea.vmem %s216_s28, 1024  ;;  %p2174_p2 = scmp.lt.s32.totalorder %s216_s28, %s216_s28 }
  0x3a   : > { %p2167_p1 = scmp.ne.s32.totalorder %s216_s28, %s2166_s10  ;;  %p2175_p0 = scmp.lt.s32.totalorder %s2166_s10, %s2166_s10 }
  0x3c   : > { %p2169_p12 = pnand %p2167_p1, %p2079_p11  ;;  %p2176_p3 = por %p2175_p0, %p2174_p2 }
  0x3e   : > { %p2170_p13 = pneg %p2169_p12 }
  0x40   : > { %p2177_p5 = pnand %p2176_p3, %p2170_p13 }
  0x42   : > { %2180 = shalt.err (!%p2177_p5)
}
  0x43   : > { %1938 = dma.hbm_to_vmem [thread:$0]  (!%p2375_p10), %s2718_s4, 1024, %s216_s28, [#allocation9], %s2285_s8, %s2285_s8, %s2286_s9  }
  0x44   : > { %s2426_s15 = sadd.s32 1, %s2281_s21   ;;  %s30_s16 = sadd.s32 1, %s2277_s20 }
  0x45   : > { %s27_s29 = ssub.s32 %s2281_s21, %s2426_s15  ;;  %p37_p2 = scmp.ne.s32.totalorder %s2277_s20, %s2273_s19 }
  0x46   : > { %p28_p1 = scmp.eq.s32.totalorder %s27_s29, 0  ;;  %p38_p11 = scmp.eq.s32.totalorder %s2281_s21, 0 }
  0x47   : > { %p2729_p9 = scmp.eq.s32.totalorder %s2348_s22, 7  ;;  %p1951_p13 = scmp.lt.s32.totalorder %s2281_s21, 8 }
  0x48   : > { %s2435_s17 = scalar_select %p28_p1, %s2277_s20, %s30_s16  }
  0x49   : > { %p39_p7 = por %p38_p11, %p37_p2  ;;  %p2439_p12 = por %p2729_p9, %p37_p2 }
  0x4a   : > { %s229_s27 = sand.u32 1, %s2277_s20   ;;  %s1672_s8 = sshll.u32 %s2281_s21, 8 }
  0x4b   : > { %s2730_s23 = scalar_select %p2439_p12, 1, 0 }
  0x4c   : > { %s1593_s30 = sshll.u32 %s229_s27, 4  ;;  %s2449_s6 = scalar_lea.hbm %s2714_s0, %s1672_s8 }
  0x4d   : > { %s233_s7 = scalar_lea.vmem [#allocation2], %s1593_s30  ;;  %p2453_p10 = pnand %p1951_p13, %p39_p7 }
  0x4e   : > { %s240_s10 = sshll.u32 %s233_s7, 4  ;;  %s2457_s12 = scalar_lea.sflag [#allocation3], %s229_s27  ;;  %s2451_s10 = int_to_ptr.vmem [resolvable:$true] %s240_s10 }
  0x4f   : > { %s2181_s29 = scalar_lea.hbm %s2449_s6, 256  ;;  %p2183_p3 = pneg %p2453_p10 }
  0x50   : > { %p2182_p0 = scmp.ne.s32.totalorder %s2449_s6, %s2181_s29  ;;  %s2186_s30 = scalar_lea.hbm %s2714_s0, 2048 }
  0x51   : > { %p2187_p2 = scmp.lt.s32.totalorder %s2449_s6, %s2714_s0  ;;  %p2188_p11 = scmp.lt.s32.totalorder %s2186_s30, %s2181_s29 }
  0x52   : > { %p2184_p5 = pnand %p2183_p3, %p2182_p0 }
  0x53   : > { %p2189_p7 = por %p2188_p11, %p2187_p2 }
  0x54   : > { %p2185_p1 = pneg %p2184_p5 }
  0x56   : > { %p2190_p9 = pnand %p2189_p7, %p2185_p1 }
  0x58   : > { %2193 = shalt.err (!%p2190_p9)
}
  0x59   : > { %s2194_s27 = scalar_lea.vmem %s2451_s10, 256  ;;  %s2291_s7 = smov [#allocation2]  }
  0x5a   : > { %p2195_p13 = scmp.ne.s32.totalorder %s2451_s10, %s2194_s27  ;;  %s2199_s13 = sshll.u32 %s2291_s7, 4  ;;  %s2200_s13 = int_to_ptr.vmem [resolvable:$false] %s2199_s13 }
  0x5b   : > { %s2201_s16 = scalar_lea.vmem %s2200_s13, 512  ;;  %p2202_p5 = scmp.lt.s32.totalorder %s2451_s10, %s2200_s13 }
  0x5c   : > { %p2197_p6 = pnand %p2195_p13, %p2183_p3  ;;  %p2203_p12 = scmp.lt.s32.totalorder %s2201_s16, %s2194_s27 }
  0x5e   : > { %p2198_p0 = pneg %p2197_p6  ;;  %p2204_p4 = por %p2203_p12, %p2202_p5 }
  0x60   : > { %p2205_p8 = pnand %p2204_p4, %p2198_p0 }
  0x62   : > { %2208 = shalt.err (!%p2205_p8)
}
  0x63   : > { %s2732_s29 = smov 128   ;;  %p2733_p6 = scmp.ne.s32.totalorder %s2727_s26, 0 }
  0x64   : > { %1942 = dma.hbm_to_vmem [thread:$0]  (!%p2453_p10), %s2449_s6, 256, %s2451_s10, %s2457_s12, %s2732_s29, %s2732_s29, %s2288_s14  }
  0x65   : > { %252 = sbr.rel (%p2733_p6) target bundleno = 2076 (0x81c), region = 40  ;;  %s2484_s8 = sand.u32 (!%p2733_p6), 1, %s2273_s19  }
  0x66   : > { %s1597_s13 = sshll.u32 (!%p2733_p6), %s2484_s8, 4  ;;  %s255_s30 = scalar_lea.sflag (!%p2733_p6), [#allocation3], %s2484_s8 }
  0x67   : > { %s2490_s11 = scalar_lea.vmem (!%p2733_p6), [#allocation2], %s1597_s13  ;;  %p2734_p4 = scmp.ne.s32.totalorder (!%p2733_p6), %s2725_s24, 0 }
  0x6a   : > { %2252 = dma.done.wait (%p2734_p4), %s255_s30, 256  }
  0x6b   : > { %2254 = vsyncadd (%p2734_p4), %s255_s30, 4294967040  ;;  %p2735_p8 = scmp.eq.s32.totalorder %s2348_s22, 0 }
  0x6d   : > { %2256 = dma.done.wait (%p2735_p8), [#allocation6], 7168   ;;  %p2736_p12 = pmov %p2735_p8 }
  0x6e   : > { %p2737_p10 = pmov %p2735_p8 }
  0x6f   : > { %2258 = vsyncadd (%p2736_p12), [#allocation6], 4294960128 }
  0x70   : > { %2260 = dma.done.wait (%p2737_p10), [#allocation9], 1280   ;;  %p2738_p3 = pmov %p2735_p8 }
  0x71   : > { %v2292_v0 = vmov 0.0   ;;  %vm2293_vm0 = vmmov 0   ;;  %v2001_v1 = vld [vmem:[#allocation5 + $0x38] sm:$0xff]   ;;  %v2002_v2 = vld [vmem:[#allocation5 + $0x30] sm:$0xff]   ;;  %v2003_v3 = vld [vmem:[#allocation5 + $0x28] sm:$0xff]   ;;  %v323_v20 = vlaneseq  ;;  %s300_s24 = scalar_lea.vmem [#allocation11], %s1597_s13 }
  0x72   : > { %2262 = vsyncadd (%p2738_p3), [#allocation9], 4294966016  ;;  %1746 = vmatprep.subr.bf16.mxu0 %v2292_v0  ;;  %1762 = vmatprep.mubr.msk.bf16.mxu0 %vm2293_vm0, %v2292_v0  ;;  %v2009_v4 = vld [vmem:[#allocation7 + $0x38] sm:$0xff]   ;;  %v2004_v5 = vld [vmem:[#allocation5 + $0x20] sm:$0xff]   ;;  %s1475_s26 = sshll.u32 %s300_s24, 4  ;;  %s1673_s14 = sshll.u32 %s2348_s22, 8  ;;  %s2667_s26 = int_to_ptr.vmem [resolvable:$true] %s1475_s26 }
  0x73   : > { %1766 = vmatprep.subr.bf16.mxu1 %v2292_v0  ;;  %1782 = vmatprep.mubr.msk.bf16.mxu1 %vm2293_vm0, %v2292_v0  ;;  %v2010_v6 = vld [vmem:[#allocation7 + $0x30] sm:$0xff]   ;;  %v2005_v7 = vld [vmem:[#allocation5 + $0x18] sm:$0xff]   ;;  %v2011_v8 = vld [vmem:[#allocation7 + $0x28] sm:$0xff]   ;;  %v2530_v21 = vshrl.u32 %v323_v20, 7  ;;  %s2672_s12 = scalar_lea.hbm %s2719_s5, %s1673_s14  ;;  %s1462_s9 = scalar_lea.sflag [#allocation4], %s2484_s8 }
  0x74   : > { %1747 = vmatpush3.bf16.msra.mxu0 %v2001_v1  ;;  %1767 = vmatpush3.bf16.msra.mxu1 %v2009_v4  ;;  %v2006_v9 = vld [vmem:[#allocation5 + $0x10] sm:$0xff]   ;;  %v2012_v10 = vld [vmem:[#allocation7 + $0x20] sm:$0xff]   ;;  %v2007_v11 = vld [vmem:[#allocation5 + $0x8] sm:$0xff]   ;;  %s2209_s28 = scalar_lea.vmem %s2667_s26, 256  ;;  %p2739_p2 = scmp.ne.s32.totalorder %s2730_s23, 0 }
  0x75   : > { %1748 = vmatprep.subr.bf16.mxu0 %v2292_v0  ;;  %1768 = vmatprep.subr.bf16.mxu1 %v2292_v0  ;;  %v2008_v12 = vld [vmem:[#allocation5] sm:$0xff]   ;;  %v305_v14 = vld [vmem:[%s2490_s11 + $0x8] sm:$0xff]  ;;  %v2014_v17 = vld [vmem:[#allocation7 + $0x10] sm:$0xff]   ;;  %v325_v22 = vsub.s32 0, %v2530_v21  ;;  %vm420_vm1 = vcmp.lt.s32.totalorder %v2530_v21, 1  ;;  %vm425_vm2 = vcmp.lt.s32.totalorder %v2530_v21, 7  ;;  %p2210_p1 = scmp.ne.s32.totalorder %s2667_s26, %s2209_s28 }
  0x76   : > { %v304_v13 = vld [vmem:[%s2490_s11] sm:$0xff]  ;;  %v2013_v16 = vld [vmem:[#allocation7 + $0x18] sm:$0xff]   ;;  %v2015_v18 = vld [vmem:[#allocation7 + $0x8] sm:$0xff]   ;;  %v574_v20 = vsub.s32 3, %v2530_v21  ;;  %s2294_s22 = smov [#allocation11]  }
  0x77   : > { %v306_v15 = vpack.c.bf16 %v305_v14, %v304_v13  ;;  %v2016_v19 = vld [vmem:[#allocation7] sm:$0xff]   ;;  %v2017_v44 = vld [vmem:[#allocation7 + $0x78] sm:$0xff]   ;;  %v2018_v45 = vld [vmem:[#allocation7 + $0x70] sm:$0xff]   ;;  %p2211_p11 = pnand %p2210_p1, %p2739_p2  ;;  %s2213_s27 = sshll.u32 %s2294_s22, 4  ;;  %s2214_s27 = int_to_ptr.vmem [resolvable:$false] %s2213_s27 }
  0x78   : > { %1749 = vmatpush3.bf16.msra.mxu0 %v2002_v2  ;;  %1769 = vmatpush3.bf16.msra.mxu1 %v2010_v6  ;;  %v2533_v23 = vld [vmem:[#allocation8] sm:$0xff]  ;;  %v2019_v46 = vld [vmem:[#allocation7 + $0x68] sm:$0xff]   ;;  %v2021_v48 = vld [vmem:[#allocation7 + $0x58] sm:$0xff]   ;;  %s2215_s7 = scalar_lea.vmem %s2214_s27, 512  ;;  %p2216_p9 = scmp.lt.s32.totalorder %s2667_s26, %s2214_s27 }
  0x79   : > { %1750 = vmatprep.subr.bf16.mxu0 %v2292_v0  ;;  %1770 = vmatprep.subr.bf16.mxu1 %v2292_v0  ;;  %v326_v24 = vrot.slane %v2533_v23, %v325_v22  ;;  %v2020_v47 = vld [vmem:[#allocation7 + $0x60] sm:$0xff]   ;;  %v2022_v49 = vld [vmem:[#allocation7 + $0x50] sm:$0xff]   ;;  %v2023_v50 = vld [vmem:[#allocation7 + $0x48] sm:$0xff]   ;;  %p2212_p7 = pneg %p2211_p11  ;;  %p2217_p13 = scmp.lt.s32.totalorder %s2215_s7, %s2209_s28 }
  0x7a   : > { %v2024_v51 = vld [vmem:[#allocation7 + $0x40] sm:$0xff]  }
  0x7b   : > { %p2218_p0 = por %p2217_p13, %p2216_p9 }
  0x7c   : > { %1751 = vmatpush3.bf16.msra.mxu0 %v2003_v3  ;;  %1771 = vmatpush3.bf16.msra.mxu1 %v2011_v8 }
  0x7d   : > { %1752 = vmatprep.subr.bf16.mxu0 %v2292_v0  ;;  %1772 = vmatprep.subr.bf16.mxu1 %v2292_v0  ;;  %p2219_p5 = pnand %p2218_p0, %p2212_p7 }
  0x80   : > { %1753 = vmatpush3.bf16.msra.mxu0 %v2004_v5  ;;  %1773 = vmatpush3.bf16.msra.mxu1 %v2012_v10 }
  0x81   : > { %1754 = vmatprep.subr.bf16.mxu0 %v2292_v0  ;;  %1774 = vmatprep.subr.bf16.mxu1 %v2292_v0 }
  0x84   : > { %1755 = vmatpush3.bf16.msra.mxu0 %v2005_v7  ;;  %1775 = vmatpush3.bf16.msra.mxu1 %v2013_v16  ;;  %v568_v16 = vsub.s32 2, %v2530_v21 }
  0x85   : > { %1756 = vmatprep.subr.bf16.mxu0 %v2292_v0  ;;  %1776 = vmatprep.subr.bf16.mxu1 %v2292_v0 }
  0x88   : > { %1757 = vmatpush3.bf16.msra.mxu0 %v2006_v9  ;;  %1777 = vmatpush3.bf16.msra.mxu1 %v2014_v17 }
  0x89   : > { %1758 = vmatprep.subr.bf16.mxu0 %v2292_v0  ;;  %1778 = vmatprep.subr.bf16.mxu1 %v2292_v0 }
  0x8c   : > { %1759 = vmatpush3.bf16.msra.mxu0 %v2007_v11  ;;  %1779 = vmatpush3.bf16.msra.mxu1 %v2015_v18 }
  0x8d   : > { %1760 = vmatprep.subr.bf16.mxu0 %v2292_v0  ;;  %1780 = vmatprep.subr.bf16.mxu1 %v2292_v0 }
  0x90   : > { %1761 = vmatpush3.bf16.msra.mxu0 %v2008_v12  ;;  %1781 = vmatpush3.bf16.msra.mxu1 %v2016_v19 }
  0x91   : > { %1786 = vmatprep.subr.bf16.mxu0 %v2292_v0  ;;  %1806 = vmatprep.subr.bf16.mxu1 %v2292_v0 }
  0x93   : > { %1763 = vmatmul.mubr.bf16.vlgmr.msra.gmra.mxu0 %v306_v15 }
  0x94   : > { %1802 = vmatprep.mubr.msk.bf16.mxu0 %vm2293_vm0, %v2292_v0  ;;  %1787 = vmatpush3.bf16.msra.mxu0 %v2017_v44 }
  0x95   : > { %1788 = vmatprep.subr.bf16.mxu0 %v2292_v0 }
  0x98   : > { %1789 = vmatpush3.bf16.msra.mxu0 %v2018_v45 }
  0x99   : > { %1790 = vmatprep.subr.bf16.mxu0 %v2292_v0 }
  0x9c   : > { %1791 = vmatpush3.bf16.msra.mxu0 %v2019_v46 }
  0x9d   : > { %1792 = vmatprep.subr.bf16.mxu0 %v2292_v0 }
  0xa0   : > { %1793 = vmatpush3.bf16.msra.mxu0 %v2020_v47 }
  0xa1   : > { %1794 = vmatprep.subr.bf16.mxu0 %v2292_v0 }
  0xa4   : > { %1795 = vmatpush3.bf16.msra.mxu0 %v2021_v48 }
  0xa5   : > { %1796 = vmatprep.subr.bf16.mxu0 %v2292_v0 }
  0xa8   : > { %1797 = vmatpush3.bf16.msra.mxu0 %v2022_v49 }
  0xa9   : > { %1798 = vmatprep.subr.bf16.mxu0 %v2292_v0 }
  0xac   : > { %1799 = vmatpush3.bf16.msra.mxu0 %v2023_v50 }
  0xad   : > { %1800 = vmatprep.subr.bf16.mxu0 %v2292_v0 }
  0xb0   : > { %1801 = vmatpush3.bf16.msra.mxu0 %v2024_v51 }
  0xb1   : > { %1826 = vmatprep.subr.bf16.mxu0 %v2292_v0 }
 0x153   : > { %v409_v25 = vpop.f32.mrf.mxu0 }
 0x154   : > { %v410_v27 = vadd.f32 %v409_v25, %v326_v24 }
 0x155   : > { %v1764_v26 = vpop.f32.mrf.mxu0 }
 0x156   : > { %v416_v31 = vrot.slane %v410_v27, 7  ;;  %v423_v34 = vrot.slane %v410_v27, 1 }
 0x157   : > { %v412_v28 = vpop.f32.mrf.mxu0 }
 0x158   : > { %v413_v29 = vadd.f32 %v412_v28, %v326_v24 }
 0x159   : > { %v1765_v30 = vpop.f32.mrf.mxu0 }
 0x15a   : > { %v417_v32 = vrot.slane %v413_v29, 7  ;;  %v424_v33 = vrot.slane %v413_v29, 1 }
 0x15c   : > { %v421_v35 = vsel %vm420_vm1, %v416_v31, %v417_v32  ;;  %v422_v36 = vsel %vm420_vm1, %v417_v32, %v416_v31  ;;  %v426_v39 = vsel %vm425_vm2, %v423_v34, %v424_v33  ;;  %v427_v40 = vsel %vm425_vm2, %v424_v33, %v423_v34  ;;  %v2025_v33 = vld [vmem:[#allocation7 + $0xb8] sm:$0xff]   ;;  %v2026_v34 = vld [vmem:[#allocation7 + $0xb0] sm:$0xff]  }
 0x15d   : > { %v429_v37 = vadd.f32 %v421_v35, %v413_v29  ;;  %v428_v38 = vadd.f32 %v422_v36, %v410_v27  ;;  %v2027_v35 = vld [vmem:[#allocation7 + $0xa8] sm:$0xff]   ;;  %v2028_v36 = vld [vmem:[#allocation7 + $0xa0] sm:$0xff]  }
 0x15f   : > { %v430_v41 = vadd.f32 %v428_v38, %v426_v39  ;;  %v431_v42 = vadd.f32 %v429_v37, %v427_v40  ;;  %v2029_v37 = vld [vmem:[#allocation7 + $0x98] sm:$0xff]   ;;  %v2030_v38 = vld [vmem:[#allocation7 + $0x90] sm:$0xff]   ;;  %v2031_v39 = vld [vmem:[#allocation7 + $0x88] sm:$0xff]  }
 0x160   : > { %v2032_v40 = vld [vmem:[#allocation7 + $0x80] sm:$0xff]  }
 0x161   : > { %v432_v43 = vpack.c.bf16 %v431_v42, %v430_v41 }
 0x163   : > { %1783 = vmatmul.mubr.bf16.vlgmr.msra.gmra.mxu1 %v432_v43 }
 0x164   : > { %1822 = vmatprep.mubr.msk.bf16.mxu1 %vm2293_vm0, %v2292_v0  ;;  %1807 = vmatpush3.bf16.msra.mxu1 %v2025_v33 }
 0x165   : > { %1808 = vmatprep.subr.bf16.mxu1 %v2292_v0 }
 0x168   : > { %1809 = vmatpush3.bf16.msra.mxu1 %v2026_v34 }
 0x169   : > { %1810 = vmatprep.subr.bf16.mxu1 %v2292_v0 }
 0x16c   : > { %1811 = vmatpush3.bf16.msra.mxu1 %v2027_v35 }
 0x16d   : > { %1812 = vmatprep.subr.bf16.mxu1 %v2292_v0 }
 0x170   : > { %1813 = vmatpush3.bf16.msra.mxu1 %v2028_v36  ;;  %v2033_v36 = vld [vmem:[#allocation7 + $0xf8] sm:$0xff]  }
 0x171   : > { %1814 = vmatprep.subr.bf16.mxu1 %v2292_v0 }
 0x174   : > { %1815 = vmatpush3.bf16.msra.mxu1 %v2029_v37  ;;  %v2034_v37 = vld [vmem:[#allocation7 + $0xf0] sm:$0xff]  }
 0x175   : > { %1816 = vmatprep.subr.bf16.mxu1 %v2292_v0 }
 0x178   : > { %1817 = vmatpush3.bf16.msra.mxu1 %v2030_v38  ;;  %v2035_v38 = vld [vmem:[#allocation7 + $0xe8] sm:$0xff]  }
 0x179   : > { %1818 = vmatprep.subr.bf16.mxu1 %v2292_v0 }
 0x17c   : > { %1819 = vmatpush3.bf16.msra.mxu1 %v2031_v39  ;;  %v2036_v39 = vld [vmem:[#allocation7 + $0xe0] sm:$0xff]  }
 0x17d   : > { %1820 = vmatprep.subr.bf16.mxu1 %v2292_v0 }
 0x180   : > { %1821 = vmatpush3.bf16.msra.mxu1 %v2032_v40  ;;  %v2037_v40 = vld [vmem:[#allocation7 + $0xd8] sm:$0xff]  }
 0x181   : > { %1846 = vmatprep.subr.bf16.mxu1 %v2292_v0 }
 0x223   : > { %v531_v52 = vpop.f32.mrf.mxu1 }
 0x224   : > { %v545_v55 = vmul.f32 %v531_v52, %v531_v52 }
 0x225   : > { %v1784_v53 = vpop.f32.mrf.mxu1 }
 0x227   : > { %v534_v54 = vpop.f32.mrf.mxu1 }
 0x228   : > { %v538_v56 = vadd.f32 %v534_v54, %v531_v52  ;;  %v546_v57 = vmul.f32 %v534_v54, %v534_v54 }
 0x229   : > { %v1785_v58 = vpop.f32.mrf.mxu1 }
 0x22a   : > { %v539_v59 = vrot.slane %v538_v56, 4  ;;  %v547_v60 = vadd.f32 %v546_v57, %v545_v55 }
 0x22c   : > { %v540_v61 = vadd.f32 %v539_v59, %v538_v56  ;;  %v548_v62 = vrot.slane %v547_v60, 4 }
 0x22e   : > { %v541_v63 = vrot.slane %v540_v61, 2  ;;  %v549_v1 = vadd.f32 %v548_v62, %v547_v60 }
 0x230   : > { %v542_v2 = vadd.f32 %v541_v63, %v540_v61  ;;  %v550_v3 = vrot.slane %v549_v1, 2 }
 0x232   : > { %v543_v4 = vrot.slane %v542_v2, 1  ;;  %v551_v5 = vadd.f32 %v550_v3, %v549_v1 }
 0x234   : > { %v544_v6 = vadd.f32 %v543_v4, %v542_v2  ;;  %v552_v7 = vrot.slane %v551_v5, 1 }
 0x236   : > { %v553_v8 = vadd.f32 %v552_v7, %v551_v5  ;;  %v554_v9 = vmul.f32 0.0625, %v544_v6  ;;  %v717_v5 = vsub.s32 4, %v2530_v21 }
 0x238   : > { %v555_v10 = vmul.f32 0.0625, %v553_v8  ;;  %v556_v11 = vmul.f32 %v554_v9, %v554_v9 }
 0x23a   : > { %v557_v12 = vsub.f32 %v555_v10, %v556_v11 }
 0x23c   : > { %v558_v13 = vadd.f32 1e-05, %v557_v12 }
 0x23e   : > { %2065 = vrsqrt.f32 %v558_v13 }
 0x24b   : > { %v2066_v14 = vpop.eup %2065 }
 0x24c   : > { %v560_v15 = vmul.f32 %v2066_v14, %v2533_v23 }
 0x24e   : > { %v561_v17 = vmul.f32 %v560_v15, %v554_v9  ;;  %v569_v19 = vrot.slane %v560_v15, %v568_v16  ;;  %v723_v9 = vsub.s32 5, %v2530_v21 }
 0x250   : > { %v563_v18 = vrot.slane %v561_v17, 7  ;;  %v570_v25 = vmul.f32 %v569_v19, %v531_v52  ;;  %v571_v26 = vmul.f32 %v569_v19, %v534_v54 }
 0x252   : > { %v565_v24 = vsub.f32 %v2533_v23, %v563_v18 }
 0x254   : > { %v575_v27 = vrot.slane %v565_v24, %v574_v20 }
 0x256   : > { %v576_v28 = vadd.f32 %v575_v27, %v570_v25  ;;  %v577_v29 = vadd.f32 %v575_v27, %v571_v26 }
 0x258   : > { %v579_v30 = vmax.f32 %v577_v29, 0.0  ;;  %v578_v31 = vmax.f32 %v576_v28, 0.0 }
 0x25a   : > { %v580_v32 = vpack.c.bf16 %v579_v30, %v578_v31 }
 0x25c   : > { %1803 = vmatmul.mubr.bf16.vlgmr.msra.gmra.mxu0 %v580_v32 }
 0x25d   : > { %1842 = vmatprep.mubr.msk.bf16.mxu0 %vm2293_vm0, %v2292_v0  ;;  %1827 = vmatpush3.bf16.msra.mxu0 %v2033_v36  ;;  %v2048_v36 = vld [vmem:[#allocation7 + $0x100] sm:$0xff]  }
 0x25e   : > { %1828 = vmatprep.subr.bf16.mxu0 %v2292_v0 }
 0x261   : > { %1829 = vmatpush3.bf16.msra.mxu0 %v2034_v37 }
 0x262   : > { %1830 = vmatprep.subr.bf16.mxu0 %v2292_v0 }
 0x265   : > { %1831 = vmatpush3.bf16.msra.mxu0 %v2035_v38 }
 0x266   : > { %1832 = vmatprep.subr.bf16.mxu0 %v2292_v0 }
 0x269   : > { %1833 = vmatpush3.bf16.msra.mxu0 %v2036_v39 }
 0x26a   : > { %1834 = vmatprep.subr.bf16.mxu0 %v2292_v0 }
 0x26d   : > { %1835 = vmatpush3.bf16.msra.mxu0 %v2037_v40 }
 0x26e   : > { %1836 = vmatprep.subr.bf16.mxu0 %v2292_v0 }
 0x31c   : > { %v680_v41 = vpop.f32.mrf.mxu0 }
 0x31d   : > { %v694_v44 = vmul.f32 %v680_v41, %v680_v41 }
 0x31e   : > { %v1804_v42 = vpop.f32.mrf.mxu0 }
 0x31f   : > { %v2039_v42 = vld [vmem:[#allocation7 + $0xc8] sm:$0xff]  }
 0x320   : > { %v683_v43 = vpop.f32.mrf.mxu0 }
 0x321   : > { %v687_v45 = vadd.f32 %v683_v43, %v680_v41  ;;  %v695_v46 = vmul.f32 %v683_v43, %v683_v43 }
 0x322   : > { %v1805_v47 = vpop.f32.mrf.mxu0 }
 0x323   : > { %v688_v48 = vrot.slane %v687_v45, 4  ;;  %v696_v49 = vadd.f32 %v695_v46, %v694_v44 }
 0x325   : > { %v689_v50 = vadd.f32 %v688_v48, %v687_v45  ;;  %v697_v51 = vrot.slane %v696_v49, 4 }
 0x327   : > { %v690_v52 = vrot.slane %v689_v50, 2  ;;  %v698_v53 = vadd.f32 %v697_v51, %v696_v49 }
 0x329   : > { %v691_v54 = vadd.f32 %v690_v52, %v689_v50  ;;  %v699_v55 = vrot.slane %v698_v53, 2 }
 0x32b   : > { %v692_v56 = vrot.slane %v691_v54, 1  ;;  %v700_v57 = vadd.f32 %v699_v55, %v698_v53 }
 0x32d   : > { %v693_v58 = vadd.f32 %v692_v56, %v691_v54  ;;  %v701_v59 = vrot.slane %v700_v57, 1 }
 0x32f   : > { %v702_v60 = vadd.f32 %v701_v59, %v700_v57  ;;  %v703_v61 = vmul.f32 0.0625, %v693_v58 }
 0x331   : > { %v704_v62 = vmul.f32 0.0625, %v702_v60  ;;  %v705_v63 = vmul.f32 %v703_v61, %v703_v61 }
 0x333   : > { %v706_v1 = vsub.f32 %v704_v62, %v705_v63 }
 0x335   : > { %v707_v2 = vadd.f32 1e-05, %v706_v1 }
 0x337   : > { %2067 = vrsqrt.f32 %v707_v2 }
 0x344   : > { %v2068_v3 = vpop.eup %2067 }
 0x345   : > { %v709_v4 = vmul.f32 %v2068_v3, %v2533_v23 }
 0x347   : > { %v710_v6 = vmul.f32 %v709_v4, %v703_v61  ;;  %v718_v8 = vrot.slane %v709_v4, %v717_v5 }
 0x349   : > { %v712_v7 = vrot.slane %v710_v6, 7  ;;  %v719_v11 = vmul.f32 %v718_v8, %v680_v41  ;;  %v720_v12 = vmul.f32 %v718_v8, %v683_v43  ;;  %v2038_v41 = vld [vmem:[#allocation7 + $0xd0] sm:$0xff]   ;;  %v2040_v43 = vld [vmem:[#allocation7 + $0xc0] sm:$0xff]  }
 0x34a   : > { %1837 = vmatpush3.bf16.msra.mxu0 %v2038_v41 }
 0x34b   : > { %v714_v10 = vsub.f32 %v2533_v23, %v712_v7  ;;  %1838 = vmatprep.subr.bf16.mxu0 %v2292_v0 }
 0x34d   : > { %v724_v13 = vrot.slane %v714_v10, %v723_v9  ;;  %v878_v10 = vsub.s32 6, %v2530_v21 }
 0x34e   : > { %1839 = vmatpush3.bf16.msra.mxu0 %v2039_v42 }
 0x34f   : > { %v725_v14 = vadd.f32 %v724_v13, %v719_v11  ;;  %v726_v15 = vadd.f32 %v724_v13, %v720_v12  ;;  %1840 = vmatprep.subr.bf16.mxu0 %v2292_v0 }
 0x351   : > { %v727_v17 = vmax.f32 %v725_v14, 0.0  ;;  %v728_v18 = vmax.f32 %v726_v15, 0.0  ;;  %v884_v14 = vsub.s32 7, %v2530_v21 }
 0x352   : > { %1841 = vmatpush3.bf16.msra.mxu0 %v2040_v43 }
 0x353   : > { %v729_v19 = vrot.slane %v727_v17, 7  ;;  %v730_v24 = vrot.slane %v728_v18, 7  ;;  %v733_v25 = vrot.slane %v727_v17, 1  ;;  %v734_v26 = vrot.slane %v728_v18, 1  ;;  %1866 = vmatprep.subr.bf16.mxu0 %v2292_v0 }
 0x355   : > { %v731_v27 = vsel %vm420_vm1, %v729_v19, %v730_v24  ;;  %v732_v28 = vsel %vm420_vm1, %v730_v24, %v729_v19  ;;  %v735_v31 = vsel %vm425_vm2, %v733_v25, %v734_v26  ;;  %v736_v32 = vsel %vm425_vm2, %v734_v26, %v733_v25 }
 0x356   : > { %v738_v29 = vadd.f32 %v731_v27, %v728_v18  ;;  %v737_v30 = vadd.f32 %v732_v28, %v727_v17 }
 0x358   : > { %v739_v33 = vadd.f32 %v737_v30, %v735_v31  ;;  %v740_v34 = vadd.f32 %v738_v29, %v736_v32  ;;  %v2041_v29 = vld [vmem:[#allocation7 + $0x138] sm:$0xff]   ;;  %v2042_v30 = vld [vmem:[#allocation7 + $0x130] sm:$0xff]   ;;  %v2043_v31 = vld [vmem:[#allocation7 + $0x128] sm:$0xff]  }
 0x359   : > { %v2044_v32 = vld [vmem:[#allocation7 + $0x120] sm:$0xff]  }
 0x35a   : > { %v741_v35 = vpack.c.bf16 %v740_v34, %v739_v33  ;;  %v2045_v33 = vld [vmem:[#allocation7 + $0x118] sm:$0xff]   ;;  %v2046_v34 = vld [vmem:[#allocation7 + $0x110] sm:$0xff]  }
 0x35c   : > { %1823 = vmatmul.mubr.bf16.vlgmr.msra.gmra.mxu1 %v741_v35  ;;  %v2047_v35 = vld [vmem:[#allocation7 + $0x108] sm:$0xff]  }
 0x35d   : > { %1862 = vmatprep.mubr.msk.bf16.mxu1 %vm2293_vm0, %v2292_v0  ;;  %1847 = vmatpush3.bf16.msra.mxu1 %v2041_v29 }
 0x35e   : > { %1848 = vmatprep.subr.bf16.mxu1 %v2292_v0 }
 0x361   : > { %1849 = vmatpush3.bf16.msra.mxu1 %v2042_v30 }
 0x362   : > { %1850 = vmatprep.subr.bf16.mxu1 %v2292_v0 }
 0x365   : > { %1851 = vmatpush3.bf16.msra.mxu1 %v2043_v31 }
 0x366   : > { %1852 = vmatprep.subr.bf16.mxu1 %v2292_v0 }
 0x369   : > { %1853 = vmatpush3.bf16.msra.mxu1 %v2044_v32 }
 0x36a   : > { %1854 = vmatprep.subr.bf16.mxu1 %v2292_v0 }
 0x36d   : > { %1855 = vmatpush3.bf16.msra.mxu1 %v2045_v33  ;;  %v2049_v33 = vld [vmem:[#allocation7 + $0x178] sm:$0xff]  }
 0x36e   : > { %1856 = vmatprep.subr.bf16.mxu1 %v2292_v0 }
 0x371   : > { %1857 = vmatpush3.bf16.msra.mxu1 %v2046_v34  ;;  %v2050_v34 = vld [vmem:[#allocation7 + $0x170] sm:$0xff]  }
 0x372   : > { %1858 = vmatprep.subr.bf16.mxu1 %v2292_v0 }
 0x375   : > { %1859 = vmatpush3.bf16.msra.mxu1 %v2047_v35  ;;  %v2051_v35 = vld [vmem:[#allocation7 + $0x168] sm:$0xff]  }
 0x376   : > { %1860 = vmatprep.subr.bf16.mxu1 %v2292_v0 }
 0x379   : > { %1861 = vmatpush3.bf16.msra.mxu1 %v2048_v36  ;;  %v2052_v36 = vld [vmem:[#allocation7 + $0x160] sm:$0xff]  }
 0x37a   : > { %1886 = vmatprep.subr.bf16.mxu1 %v2292_v0 }
 0x41c   : > { %v841_v44 = vpop.f32.mrf.mxu1 }
 0x41d   : > { %v855_v47 = vmul.f32 %v841_v44, %v841_v44 }
 0x41e   : > { %v1824_v45 = vpop.f32.mrf.mxu1 }
 0x420   : > { %v844_v46 = vpop.f32.mrf.mxu1 }
 0x421   : > { %v848_v48 = vadd.f32 %v844_v46, %v841_v44  ;;  %v856_v49 = vmul.f32 %v844_v46, %v844_v46 }
 0x422   : > { %v1825_v50 = vpop.f32.mrf.mxu1 }
 0x423   : > { %v849_v51 = vrot.slane %v848_v48, 4  ;;  %v857_v52 = vadd.f32 %v856_v49, %v855_v47 }
 0x425   : > { %v850_v53 = vadd.f32 %v849_v51, %v848_v48  ;;  %v858_v54 = vrot.slane %v857_v52, 4 }
 0x427   : > { %v851_v55 = vrot.slane %v850_v53, 2  ;;  %v859_v56 = vadd.f32 %v858_v54, %v857_v52 }
 0x429   : > { %v852_v57 = vadd.f32 %v851_v55, %v850_v53  ;;  %v860_v58 = vrot.slane %v859_v56, 2 }
 0x42b   : > { %v853_v59 = vrot.slane %v852_v57, 1  ;;  %v861_v60 = vadd.f32 %v860_v58, %v859_v56 }
 0x42d   : > { %v854_v61 = vadd.f32 %v853_v59, %v852_v57  ;;  %v862_v62 = vrot.slane %v861_v60, 1 }
 0x42f   : > { %v863_v63 = vadd.f32 %v862_v62, %v861_v60  ;;  %v864_v1 = vmul.f32 0.0625, %v854_v61  ;;  %v2616_v62 = vld [vmem:[#allocation8 + $0x8] sm:$0x3f] }
 0x431   : > { %v865_v2 = vmul.f32 0.0625, %v863_v63  ;;  %v866_v3 = vmul.f32 %v864_v1, %v864_v1 }
 0x433   : > { %v867_v4 = vsub.f32 %v865_v2, %v866_v3 }
 0x435   : > { %v868_v6 = vadd.f32 1e-05, %v867_v4 }
 0x437   : > { %2069 = vrsqrt.f32 %v868_v6  ;;  %v1033_v6 = vsub.s32 1, %v2530_v21 }
 0x444   : > { %v2070_v7 = vpop.eup %2069 }
 0x445   : > { %v870_v8 = vmul.f32 %v2070_v7, %v2533_v23 }
 0x447   : > { %v871_v11 = vmul.f32 %v870_v8, %v864_v1  ;;  %v879_v13 = vrot.slane %v870_v8, %v878_v10 }
 0x449   : > { %v873_v12 = vrot.slane %v871_v11, 7  ;;  %v880_v17 = vmul.f32 %v879_v13, %v841_v44  ;;  %v881_v18 = vmul.f32 %v879_v13, %v844_v46 }
 0x44b   : > { %v875_v15 = vsub.f32 %v2533_v23, %v873_v12 }
 0x44d   : > { %v885_v19 = vrot.slane %v875_v15, %v884_v14 }
 0x44f   : > { %v886_v24 = vadd.f32 %v885_v19, %v880_v17  ;;  %v887_v25 = vadd.f32 %v885_v19, %v881_v18 }
 0x451   : > { %v889_v26 = vmax.f32 %v887_v25, 0.0  ;;  %v888_v27 = vmax.f32 %v886_v24, 0.0 }
 0x453   : > { %v890_v28 = vpack.c.bf16 %v889_v26, %v888_v27 }
 0x455   : > { %1843 = vmatmul.mubr.bf16.vlgmr.msra.gmra.mxu0 %v890_v28 }
 0x456   : > { %1882 = vmatprep.mubr.msk.bf16.mxu0 %vm2293_vm0, %v2292_v0  ;;  %1867 = vmatpush3.bf16.msra.mxu0 %v2049_v33 }
 0x457   : > { %1868 = vmatprep.subr.bf16.mxu0 %v2292_v0 }
 0x45a   : > { %1869 = vmatpush3.bf16.msra.mxu0 %v2050_v34 }
 0x45b   : > { %1870 = vmatprep.subr.bf16.mxu0 %v2292_v0 }
 0x45e   : > { %1871 = vmatpush3.bf16.msra.mxu0 %v2051_v35 }
 0x45f   : > { %1872 = vmatprep.subr.bf16.mxu0 %v2292_v0 }
 0x462   : > { %1873 = vmatpush3.bf16.msra.mxu0 %v2052_v36 }
 0x463   : > { %1874 = vmatprep.subr.bf16.mxu0 %v2292_v0 }
 0x515   : > { %v990_v37 = vpop.f32.mrf.mxu0 }
 0x516   : > { %v1004_v40 = vmul.f32 %v990_v37, %v990_v37 }
 0x517   : > { %v1844_v38 = vpop.f32.mrf.mxu0 }
 0x518   : > { %v2054_v38 = vld [vmem:[#allocation7 + $0x150] sm:$0xff]  }
 0x519   : > { %v993_v39 = vpop.f32.mrf.mxu0 }
 0x51a   : > { %v997_v41 = vadd.f32 %v993_v39, %v990_v37  ;;  %v1005_v42 = vmul.f32 %v993_v39, %v993_v39 }
 0x51b   : > { %v1845_v43 = vpop.f32.mrf.mxu0 }
 0x51c   : > { %v998_v44 = vrot.slane %v997_v41, 4  ;;  %v1006_v45 = vadd.f32 %v1005_v42, %v1004_v40  ;;  %v2056_v40 = vld [vmem:[#allocation7 + $0x140] sm:$0xff]  }
 0x51e   : > { %v999_v46 = vadd.f32 %v998_v44, %v997_v41  ;;  %v1007_v47 = vrot.slane %v1006_v45, 4 }
 0x520   : > { %v1000_v48 = vrot.slane %v999_v46, 2  ;;  %v1008_v49 = vadd.f32 %v1007_v47, %v1006_v45 }
 0x522   : > { %v1001_v50 = vadd.f32 %v1000_v48, %v999_v46  ;;  %v1009_v51 = vrot.slane %v1008_v49, 2 }
 0x524   : > { %v1002_v52 = vrot.slane %v1001_v50, 1  ;;  %v1010_v53 = vadd.f32 %v1009_v51, %v1008_v49 }
 0x526   : > { %v1003_v54 = vadd.f32 %v1002_v52, %v1001_v50  ;;  %v1011_v55 = vrot.slane %v1010_v53, 1 }
 0x528   : > { %v1012_v56 = vadd.f32 %v1011_v55, %v1010_v53  ;;  %v1013_v57 = vmul.f32 0.0625, %v1003_v54 }
 0x52a   : > { %v1014_v58 = vmul.f32 0.0625, %v1012_v56  ;;  %v1015_v59 = vmul.f32 %v1013_v57, %v1013_v57 }
 0x52c   : > { %v1016_v60 = vsub.f32 %v1014_v58, %v1015_v59 }
 0x52e   : > { %v1017_v61 = vadd.f32 1e-05, %v1016_v60 }
 0x530   : > { %2071 = vrsqrt.f32 %v1017_v61 }
 0x53d   : > { %v2072_v63 = vpop.eup %2071 }
 0x53e   : > { %v1019_v1 = vmul.f32 %v2072_v63, %v2616_v62 }
 0x540   : > { %v1020_v2 = vmul.f32 %v1019_v1, %v1013_v57  ;;  %v1028_v4 = vrot.slane %v1019_v1, %v325_v22 }
 0x542   : > { %v1022_v3 = vrot.slane %v1020_v2, 7  ;;  %v1029_v8 = vmul.f32 %v1028_v4, %v990_v37  ;;  %v1030_v10 = vmul.f32 %v1028_v4, %v993_v39  ;;  %v2053_v37 = vld [vmem:[#allocation7 + $0x158] sm:$0xff]   ;;  %v2055_v39 = vld [vmem:[#allocation7 + $0x148] sm:$0xff]  }
 0x543   : > { %1875 = vmatpush3.bf16.msra.mxu0 %v2053_v37 }
 0x544   : > { %v1024_v7 = vsub.f32 %v2616_v62, %v1022_v3  ;;  %1876 = vmatprep.subr.bf16.mxu0 %v2292_v0 }
 0x546   : > { %v1034_v11 = vrot.slane %v1024_v7, %v1033_v6 }
 0x547   : > { %1877 = vmatpush3.bf16.msra.mxu0 %v2054_v38 }
 0x548   : > { %v1035_v12 = vadd.f32 %v1034_v11, %v1029_v8  ;;  %v1036_v13 = vadd.f32 %v1034_v11, %v1030_v10  ;;  %1878 = vmatprep.subr.bf16.mxu0 %v2292_v0 }
 0x54a   : > { %v1037_v14 = vmax.f32 %v1035_v12, 0.0  ;;  %v1038_v15 = vmax.f32 %v1036_v13, 0.0 }
 0x54b   : > { %1879 = vmatpush3.bf16.msra.mxu0 %v2055_v39 }
 0x54c   : > { %v1039_v17 = vrot.slane %v1037_v14, 7  ;;  %v1040_v18 = vrot.slane %v1038_v15, 7  ;;  %v1043_v19 = vrot.slane %v1037_v14, 1  ;;  %v1044_v24 = vrot.slane %v1038_v15, 1  ;;  %1880 = vmatprep.subr.bf16.mxu0 %v2292_v0 }
 0x54e   : > { %v1041_v22 = vsel %vm420_vm1, %v1039_v17, %v1040_v18  ;;  %v1042_v25 = vsel %vm420_vm1, %v1040_v18, %v1039_v17  ;;  %v1045_v28 = vsel %vm425_vm2, %v1043_v19, %v1044_v24  ;;  %v1046_v29 = vsel %vm425_vm2, %v1044_v24, %v1043_v19 }
 0x54f   : > { %v1048_v26 = vadd.f32 %v1041_v22, %v1038_v15  ;;  %v1047_v27 = vadd.f32 %v1042_v25, %v1037_v14  ;;  %1881 = vmatpush3.bf16.msra.mxu0 %v2056_v40  ;;  %v2057_v25 = vld [vmem:[#allocation10 + $0x38] sm:$0xff]  }
 0x551   : > { %v1049_v30 = vadd.f32 %v1047_v27, %v1045_v28  ;;  %v1050_v31 = vadd.f32 %v1048_v26, %v1046_v29  ;;  %v2058_v26 = vld [vmem:[#allocation10 + $0x30] sm:$0xff]   ;;  %v2060_v27 = vld [vmem:[#allocation10 + $0x20] sm:$0xff]   ;;  %v2063_v29 = vld [vmem:[#allocation10 + $0x8] sm:$0xff]  }
 0x552   : > { %v2062_v28 = vld [vmem:[#allocation10 + $0x10] sm:$0xff]  }
 0x553   : > { %v1051_v32 = vpack.c.bf16 %v1050_v31, %v1049_v30  ;;  %v2064_v30 = vld [vmem:[#allocation10] sm:$0xff]  }
 0x555   : > { %1863 = vmatmul.mubr.bf16.vlgmr.msra.gmra.mxu1 %v1051_v32 }
 0x556   : > { %1902 = vmatprep.mubr.msk.bf16.mxu1 %vm2293_vm0, %v2292_v0  ;;  %1887 = vmatpush3.bf16.msra.mxu1 %v2057_v25 }
 0x557   : > { %1888 = vmatprep.subr.bf16.mxu1 %v2292_v0 }
 0x55a   : > { %1889 = vmatpush3.bf16.msra.mxu1 %v2058_v26 }
 0x55b   : > { %1890 = vmatprep.subr.bf16.mxu1 %v2292_v0 }
 0x615   : > { %v1151_v41 = vpop.f32.mrf.mxu1 }
 0x616   : > { %v1165_v44 = vmul.f32 %v1151_v41, %v1151_v41 }
 0x617   : > { %v1864_v42 = vpop.f32.mrf.mxu1 }
 0x619   : > { %v1154_v43 = vpop.f32.mrf.mxu1 }
 0x61a   : > { %v1158_v45 = vadd.f32 %v1154_v43, %v1151_v41  ;;  %v1166_v46 = vmul.f32 %v1154_v43, %v1154_v43 }
 0x61b   : > { %v1865_v47 = vpop.f32.mrf.mxu1 }
 0x61c   : > { %v1159_v48 = vrot.slane %v1158_v45, 4  ;;  %v1167_v49 = vadd.f32 %v1166_v46, %v1165_v44 }
 0x61e   : > { %v1160_v50 = vadd.f32 %v1159_v48, %v1158_v45  ;;  %v1168_v51 = vrot.slane %v1167_v49, 4 }
 0x620   : > { %v1161_v52 = vrot.slane %v1160_v50, 2  ;;  %v1169_v53 = vadd.f32 %v1168_v51, %v1167_v49 }
 0x622   : > { %v1162_v54 = vadd.f32 %v1161_v52, %v1160_v50  ;;  %v1170_v55 = vrot.slane %v1169_v53, 2 }
 0x624   : > { %v1163_v56 = vrot.slane %v1162_v54, 1  ;;  %v1171_v57 = vadd.f32 %v1170_v55, %v1169_v53 }
 0x626   : > { %v1164_v58 = vadd.f32 %v1163_v56, %v1162_v54  ;;  %v1172_v59 = vrot.slane %v1171_v57, 1 }
 0x628   : > { %v1173_v60 = vadd.f32 %v1172_v59, %v1171_v57  ;;  %v1174_v61 = vmul.f32 0.0625, %v1164_v58 }
 0x62a   : > { %v1175_v63 = vmul.f32 0.0625, %v1173_v60  ;;  %v1176_v1 = vmul.f32 %v1174_v61, %v1174_v61 }
 0x62c   : > { %v1177_v2 = vsub.f32 %v1175_v63, %v1176_v1 }
 0x62e   : > { %v1178_v3 = vadd.f32 1e-05, %v1177_v2 }
 0x630   : > { %2073 = vrsqrt.f32 %v1178_v3 }
 0x63d   : > { %v2074_v4 = vpop.eup %2073 }
 0x63e   : > { %v1180_v7 = vmul.f32 %v2074_v4, %v2616_v62 }
 0x640   : > { %v1181_v8 = vmul.f32 %v1180_v7, %v1174_v61  ;;  %v1189_v11 = vrot.slane %v1180_v7, %v568_v16  ;;  %v2059_v16 = vld [vmem:[#allocation10 + $0x28] sm:$0xff]  }
 0x641   : > { %1891 = vmatpush3.bf16.msra.mxu1 %v2059_v16 }
 0x642   : > { %v1183_v10 = vrot.slane %v1181_v8, 7  ;;  %v1190_v13 = vmul.f32 %v1189_v11, %v1151_v41  ;;  %v1191_v14 = vmul.f32 %v1189_v11, %v1154_v43  ;;  %1892 = vmatprep.subr.bf16.mxu1 %v2292_v0 }
 0x644   : > { %v1185_v12 = vsub.f32 %v2616_v62, %v1183_v10  ;;  %v1369_v10 = vrot.slane %v2533_v23, %v1033_v6 }
 0x645   : > { %1893 = vmatpush3.bf16.msra.mxu1 %v2060_v27 }
 0x646   : > { %v1195_v15 = vrot.slane %v1185_v12, %v574_v20  ;;  %1894 = vmatprep.subr.bf16.mxu1 %v2292_v0  ;;  %v2061_v20 = vld [vmem:[#allocation10 + $0x18] sm:$0xff]  }
 0x648   : > { %v1196_v17 = vadd.f32 %v1195_v15, %v1190_v13  ;;  %v1197_v18 = vadd.f32 %v1195_v15, %v1191_v14 }
 0x649   : > { %1895 = vmatpush3.bf16.msra.mxu1 %v2061_v20 }
 0x64a   : > { %v1199_v19 = vmax.f32 %v1197_v18, 0.0  ;;  %v1198_v24 = vmax.f32 %v1196_v17, 0.0  ;;  %1896 = vmatprep.subr.bf16.mxu1 %v2292_v0 }
 0x64c   : > { %v1200_v22 = vpack.c.bf16 %v1199_v19, %v1198_v24 }
 0x64d   : > { %1897 = vmatpush3.bf16.msra.mxu1 %v2062_v28 }
 0x64e   : > { %1883 = vmatmul.mubr.bf16.vlgmr.msra.gmra.mxu0 %v1200_v22  ;;  %1898 = vmatprep.subr.bf16.mxu1 %v2292_v0 }
 0x651   : > { %1899 = vmatpush3.bf16.msra.mxu1 %v2063_v29 }
 0x652   : > { %1900 = vmatprep.subr.bf16.mxu1 %v2292_v0 }
 0x655   : > { %1901 = vmatpush3.bf16.msra.mxu1 %v2064_v30 }
 0x70e   : > { %v1300_v31 = vpop.f32.mrf.mxu0 }
 0x70f   : > { %v1314_v34 = vmul.f32 %v1300_v31, %v1300_v31 }
 0x710   : > { %v1884_v32 = vpop.f32.mrf.mxu0 }
 0x712   : > { %v1303_v33 = vpop.f32.mrf.mxu0 }
 0x713   : > { %v1307_v35 = vadd.f32 %v1303_v33, %v1300_v31  ;;  %v1315_v36 = vmul.f32 %v1303_v33, %v1303_v33 }
 0x714   : > { %v1885_v37 = vpop.f32.mrf.mxu0 }
 0x715   : > { %v1308_v38 = vrot.slane %v1307_v35, 4  ;;  %v1316_v39 = vadd.f32 %v1315_v36, %v1314_v34 }
 0x717   : > { %v1309_v40 = vadd.f32 %v1308_v38, %v1307_v35  ;;  %v1317_v41 = vrot.slane %v1316_v39, 4 }
 0x719   : > { %v1310_v42 = vrot.slane %v1309_v40, 2  ;;  %v1318_v43 = vadd.f32 %v1317_v41, %v1316_v39 }
 0x71b   : > { %v1311_v44 = vadd.f32 %v1310_v42, %v1309_v40  ;;  %v1319_v45 = vrot.slane %v1318_v43, 2 }
 0x71d   : > { %v1312_v46 = vrot.slane %v1311_v44, 1  ;;  %v1320_v47 = vadd.f32 %v1319_v45, %v1318_v43 }
 0x71f   : > { %v1313_v0 = vadd.f32 %v1312_v46, %v1311_v44  ;;  %v1321_v48 = vrot.slane %v1320_v47, 1 }
 0x721   : > { %v1322_v49 = vadd.f32 %v1321_v48, %v1320_v47  ;;  %v1323_v50 = vmul.f32 0.0625, %v1313_v0 }
 0x723   : > { %v1324_v51 = vmul.f32 0.0625, %v1322_v49  ;;  %v1325_v52 = vmul.f32 %v1323_v50, %v1323_v50 }
 0x725   : > { %v1326_v53 = vsub.f32 %v1324_v51, %v1325_v52 }
 0x727   : > { %v1327_v54 = vadd.f32 1e-05, %v1326_v53 }
 0x729   : > { %2075 = vrsqrt.f32 %v1327_v54 }
 0x736   : > { %v2076_v55 = vpop.eup %2075 }
 0x737   : > { %v1329_v56 = vmul.f32 %v2076_v55, %v2616_v62 }
 0x739   : > { %v1330_v57 = vmul.f32 %v1329_v56, %v1323_v50  ;;  %v1338_v59 = vrot.slane %v1329_v56, %v717_v5 }
 0x73b   : > { %v1332_v58 = vrot.slane %v1330_v57, 7  ;;  %v1339_v61 = vmul.f32 %v1338_v59, %v1300_v31  ;;  %v1340_v63 = vmul.f32 %v1338_v59, %v1303_v33 }
 0x73d   : > { %v1334_v60 = vsub.f32 %v2616_v62, %v1332_v58 }
 0x73f   : > { %v1344_v1 = vrot.slane %v1334_v60, %v723_v9 }
 0x741   : > { %v1345_v2 = vadd.f32 %v1344_v1, %v1339_v61  ;;  %v1346_v3 = vadd.f32 %v1344_v1, %v1340_v63 }
 0x743   : > { %v1348_v4 = vmax.f32 %v1346_v3, 0.0  ;;  %v1347_v7 = vmax.f32 %v1345_v2, 0.0 }
 0x745   : > { %v1349_v8 = vpack.c.bf16 %v1348_v4, %v1347_v7 }
 0x747   : > { %1903 = vmatmul.mubr.bf16.vlgmr.msra.gmra.mxu1 %v1349_v8 }
 0x807   : > { %v1452_v5 = vpop.f32.mrf.mxu1 }
 0x808   : > { %v1453_v62 = vadd.f32 %v1452_v5, %v1369_v10 }
 0x809   : > { %v1904_v11 = vpop.f32.mrf.mxu1 }
 0x80a   : > { %1459 = vst [vmem:[%s300_s24] sm:$0xff] %v1453_v62 }
 0x80b   : > { %v1455_v9 = vpop.f32.mrf.mxu1 }
 0x80c   : > { %v1456_v21 = vadd.f32 %v1455_v9, %v1369_v10 }
 0x80d   : > { %v1905_v23 = vpop.f32.mrf.mxu1 }
 0x80e   : > { %1460 = vst [vmem:[%s300_s24 + $0x8] sm:$0xff] %v1456_v21 }
 0x80f   : > { %2222 = shalt.err (!%p2219_p5)
}
 0x810   : > { %s2223_s16 = scalar_lea.hbm %s2672_s12, 256  ;;  %s2227_s30 = scalar_lea.hbm %s2719_s5, 2048 }
 0x811   : > { %p2224_p6 = scmp.ne.s32.totalorder %s2672_s12, %s2223_s16  ;;  %p2228_p12 = scmp.lt.s32.totalorder %s2672_s12, %s2719_s5 }
 0x812   : > { %p2229_p10 = scmp.lt.s32.totalorder %s2227_s30, %s2223_s16 }
 0x813   : > { %p2225_p4 = pnand %p2224_p6, %p2739_p2 }
 0x814   : > { %p2230_p3 = por %p2229_p10, %p2228_p12 }
 0x815   : > { %p2226_p8 = pneg %p2225_p4 }
 0x817   : > { %p2231_p1 = pnand %p2230_p3, %p2226_p8 }
 0x819   : > { %2234 = shalt.err (!%p2231_p1)
}
 0x81a   : > { %s2295_s14 = smov 128   ;;  %s2296_s6 = smov 8  }
 0x81b   : > { %1924 = dma.vmem_to_hbm [thread:$0]  (%p2739_p2), %s2667_s26, 256, %s2672_s12, %s1462_s9, %s2295_s14, %s2295_s14, %s2296_s6  }
 0x81c PF: > { %p1956_p11 = scmp.ge.s32.totalorder %s2281_s21, 2  ;;  %s1490_s10 = sand.u32 1, %s2269_s18  }
 0x81d   : > { %p2740_p7 = scmp.ne.s32.totalorder %s2726_s25, 0  ;;  %s1491_s28 = scalar_lea.sflag [#allocation4], %s1490_s10 }
 0x81f   : > { %p1944_p9 = pnand %p1956_p11, %p2740_p7 }
 0x821   : > { %p1945_p13 = pneg %p1944_p9 }
 0x823   : > { %2264 = dma.done.wait (%p1945_p13), %s1491_s28, 256  }
 0x824   : > { %2266 = vsyncadd (%p1945_p13), %s1491_s28, 4294967040  ;;  %p20_p0 = scmp.ge.s32.totalorder %s2426_s15, 10   ;;  %s2741_s18 = smov %s2273_s19 }
 0x825   : > { %s2742_s19 = smov %s2277_s20  ;;  %s2743_s20 = smov %s2435_s17 }
 0x826   : > { %s2744_s21 = smov %s2426_s15  ;;  %22 = sbr.rel (!%p20_p0) target bundleno = 7 (0x7), region = 106 }
 0x82b   :  { %1496 = vsyncpa [#allocation3], 1 }
 0x82c   :  { %1498 = vsyncpa [#allocation3 + $0x1], 1 }
 0x82d   :  { %1499 = vsyncpa [#allocation6], 1 }
 0x82e   :  { %1500 = vsyncpa [#allocation9], 1 }
 0x82f   :  { %1501 = vsyncpa [#allocation4], 1 }
 0x830   :  { %1503 = vsyncpa [#allocation4 + $0x1], 1 }

</bundles_post_ra>
